<compile_context>
chip_gen: v6e
topology: v6e:2x2x1
jax: 0.10.0
libtpu: 0.0.40
codegen_flags: <defaults>
</compile_context>

<pallas_src>
import jax
import jax.numpy as jnp
from jax.experimental import pallas as pl
from jax.experimental.pallas import tpu as pltpu

# Hyperparameters implied by the module (synthetic, TPU-friendly).
GENES_NUMBER = 512   # genes_number
LATENT_DIM = 32      # latent_dim
BATCH = 256

LANE = 128
SUBLANE = 8


def _round_up(x, m):
    return (x + m - 1) // m * m


def autoencoder_kernel(x_ref, w1_ref, b1_ref, w2_ref, b2_ref, dec_ref, enc_ref):
    # encoder: encoded = relu(x @ W1 + b1)
    # x arrives as f32; cast to bf16 in-kernel (hidden under the MXU work),
    # accumulate in f32.
    x_bf = x_ref[...].astype(jnp.bfloat16)
    h = jnp.dot(x_bf, w1_ref[...], preferred_element_type=jnp.float32)
    encoded = jnp.maximum(h + b1_ref[...], 0.0)              # f32 elementwise

    # decoder: decoded = tanh(encoded @ W2 + b2)
    d = jnp.dot(encoded.astype(jnp.bfloat16), w2_ref[...],
                preferred_element_type=jnp.float32)
    decoded = jnp.tanh(d + b2_ref[...])                      # f32 EUP

    # encoded output is the *unpadded* latent width (static slice of the value).
    enc_ref[...] = encoded[:, :enc_ref.shape[1]].astype(enc_ref.dtype)
    dec_ref[...] = decoded.astype(dec_ref.dtype)             # bf16 writeback


def prepare_params(w1, b1, w2, b2):
    """One-time weight prep: lane-dense latent padding + bf16 cast.

    w1: (genes, latent), b1: (1, latent), w2: (latent, genes), b2: (1, genes).
    Zero padding is inert: padded w1 columns & b1 entries give relu(0)=0 latent
    activations, and the matching zero w2 rows contribute nothing to the decoder.
    """
    G, L = w1.shape
    Lp = _round_up(L, LANE)
    w1_p = w1 if Lp == L else jnp.pad(w1, ((0, 0), (0, Lp - L)))
    b1_p = b1 if Lp == L else jnp.pad(b1, ((0, 0), (0, Lp - L)))
    w2_p = w2 if Lp == L else jnp.pad(w2, ((0, Lp - L), (0, 0)))
    return (w1_p.astype(jnp.bfloat16),
            b1_p.astype(jnp.float32),
            w2_p.astype(jnp.bfloat16),
            w2_p.shape[1] and b2.astype(jnp.float32))


def autoencoder_forward(x, w1_bf, b1_f, w2_bf, b2_f, *, latent_dim, tb=None):
    """x: (B, genes) f32. Prepared params from prepare_params().
       Returns (decoded bf16 (B, genes), encoded f32 (B, latent))."""
    B, G = x.shape
    Lp = w1_bf.shape[1]
    L = latent_dim

    # Batch tile: whole (padded) batch when small (grid=(1,)), else 512-row tiles.
    if tb is None:
        tb = min(_round_up(B, SUBLANE), 512)
    tb = max(SUBLANE, _round_up(min(tb, _round_up(B, SUBLANE)), SUBLANE))
    Bp = _round_up(B, tb)
    x_p = x if Bp == B else jnp.pad(x, ((0, Bp - B), (0, 0)))

    grid = (Bp // tb,)

    cost = pl.CostEstimate(
        flops=4 * Bp * G * Lp,                       # two matmuls
        transcendentals=Bp * G,                      # tanh
        bytes_accessed=(Bp * G * 4                   # x read (f32)
                        + w1_bf.size * 2 + w2_bf.size * 2
                        + b1_f.size * 4 + b2_f.size * 4
                        + Bp * G * 2                 # decoded write (bf16)
                        + Bp * L * 4),               # encoded write (f32)
    )

    dec, enc = pl.pallas_call(
        autoencoder_kernel,
        out_shape=(
            jax.ShapeDtypeStruct((Bp, G), jnp.bfloat16),   # decoded
            jax.ShapeDtypeStruct((Bp, L), jnp.float32),    # encoded (unpadded)
        ),
        grid_spec=pltpu.PrefetchScalarGridSpec(
            num_scalar_prefetch=0,
            grid=grid,
            in_specs=[
                pl.BlockSpec((tb, G), lambda i: (i, 0)),   # x: tiled over batch
                pl.BlockSpec((G, Lp), lambda i: (0, 0)),   # w1: resident
                pl.BlockSpec((1, Lp), lambda i: (0, 0)),   # b1: resident
                pl.BlockSpec((Lp, G), lambda i: (0, 0)),   # w2: resident
                pl.BlockSpec((1, G), lambda i: (0, 0)),    # b2: resident
            ],
            out_specs=[
                pl.BlockSpec((tb, G), lambda i: (i, 0)),   # decoded
                pl.BlockSpec((tb, L), lambda i: (i, 0)),   # encoded (full L dim)
            ],
        ),
        compiler_params=pltpu.CompilerParams(
            dimension_semantics=("parallel",),             # shard batch across TCs
        ),
        cost_estimate=cost,
    )(x_p, w1_bf, b1_f, w2_bf, b2_f)

    if Bp != B:
        dec = dec[:B]
        enc = enc[:B]
    return dec, enc


if __name__ == "__main__":
    key = jax.random.PRNGKey(0)
    kx, k1, kb1, k2, kb2 = jax.random.split(key, 5)

    # Deterministic parameter init (PyTorch nn.Linear-style uniform bounds).
    bound1 = 1.0 / (GENES_NUMBER ** 0.5)
    bound2 = 1.0 / (LATENT_DIM ** 0.5)
    # Stored transposed relative to torch's (out, in) so the kernel computes x @ W.
    w1 = jax.random.uniform(k1, (GENES_NUMBER, LATENT_DIM), jnp.float32,
                            minval=-bound1, maxval=bound1)
    b1 = jax.random.uniform(kb1, (1, LATENT_DIM), jnp.float32,
                            minval=-bound1, maxval=bound1)
    w2 = jax.random.uniform(k2, (LATENT_DIM, GENES_NUMBER), jnp.float32,
                            minval=-bound2, maxval=bound2)
    b2 = jax.random.uniform(kb2, (1, GENES_NUMBER), jnp.float32,
                            minval=-bound2, maxval=bound2)

    x = jax.random.normal(kx, (BATCH, GENES_NUMBER), jnp.float32)

    # One-time weight prep (hoisted out of the per-call path).
    params = prepare_params(w1, b1, w2, b2)

    fwd = jax.jit(lambda xx: autoencoder_forward(xx, *params,
                                                 latent_dim=LATENT_DIM))
    decoded, encoded = fwd(x)
    jax.block_until_ready((decoded, encoded))

    assert encoded.shape == (BATCH, LATENT_DIM) and encoded.dtype == jnp.float32
    assert decoded.shape == (BATCH, GENES_NUMBER) and decoded.dtype == jnp.bfloat16

    # Reference matching the kernel's bf16-operand / f32-accumulate path.
    enc_ref = jnp.maximum(
        jnp.dot(x.astype(jnp.bfloat16), w1.astype(jnp.bfloat16),
                preferred_element_type=jnp.float32) + b1, 0.0)
    dec_ref = jnp.tanh(
        jnp.dot(enc_ref.astype(jnp.bfloat16), w2.astype(jnp.bfloat16),
                preferred_element_type=jnp.float32) + b2)

    assert jnp.allclose(encoded, enc_ref, atol=2e-3, rtol=2e-3)
    # decoded is stored in bf16: compare against the reference rounded to bf16.
    assert jnp.allclose(decoded.astype(jnp.float32),
                        dec_ref.astype(jnp.bfloat16).astype(jnp.float32),
                        atol=1.6e-2, rtol=1e-2)

    # Loose sanity check against a pure-f32 reference (bf16 rounding only).
    enc_f32 = jnp.maximum(x @ w1 + b1, 0.0)
    dec_f32 = jnp.tanh(enc_f32 @ w2 + b2)
    assert jnp.allclose(encoded, enc_f32, atol=5e-2, rtol=5e-2)
    assert jnp.allclose(decoded.astype(jnp.float32), dec_f32, atol=6e-2, rtol=6e-2)

    print("KERNEL_OK")
</pallas_src>

<mosaic_0001>
module attributes {stable_mosaic.version = 11 : i64} {
  func.func @autoencoder_kernel(%arg0: i32, %arg1: memref<256x512xf32, #tpu.memory_space<vmem>>, %arg2: memref<512x128xbf16, #tpu.memory_space<vmem>>, %arg3: memref<1x128xf32, #tpu.memory_space<vmem>>, %arg4: memref<128x512xbf16, #tpu.memory_space<vmem>>, %arg5: memref<1x512xf32, #tpu.memory_space<vmem>>, %arg6: memref<256x512xbf16, #tpu.memory_space<vmem>>, %arg7: memref<256x32xf32, #tpu.memory_space<vmem>>) attributes {dimension_semantics = [#tpu.dimension_semantics<parallel>], iteration_bounds = array<i64: 1>, scalar_prefetch = 0 : i64, scratch_operands = 0 : i64, tpu.core_type = #tpu.core_type<tc>, window_params = [{transform_indices = @transform_0, window_bounds = array<i64: 256, 512>}, {pipeline_mode = #tpu.pipeline_mode<synchronous>, transform_indices = @transform_1, window_bounds = array<i64: 512, 128>}, {pipeline_mode = #tpu.pipeline_mode<synchronous>, transform_indices = @transform_2, window_bounds = array<i64: 1, 128>}, {pipeline_mode = #tpu.pipeline_mode<synchronous>, transform_indices = @transform_3, window_bounds = array<i64: 128, 512>}, {pipeline_mode = #tpu.pipeline_mode<synchronous>, transform_indices = @transform_4, window_bounds = array<i64: 1, 512>}, {transform_indices = @transform_5, window_bounds = array<i64: 256, 512>}, {transform_indices = @transform_6, window_bounds = array<i64: 256, 32>}]} {
    %c0 = arith.constant 0 : index
    %c0_0 = arith.constant 0 : index
    %0 = vector.load %arg1[%c0, %c0_0] : memref<256x512xf32, #tpu.memory_space<vmem>>, vector<256x512xf32>
    %1 = arith.truncf %0 : vector<256x512xf32> to vector<256x512xbf16>
    %c0_1 = arith.constant 0 : index
    %c0_2 = arith.constant 0 : index
    %2 = vector.load %arg2[%c0_1, %c0_2] : memref<512x128xbf16, #tpu.memory_space<vmem>>, vector<512x128xbf16>
    %cst = arith.constant dense<0.000000e+00> : vector<256x128xf32>
    %3 = tpu.matmul %1, %2, %cst {dimension_numbers = #tpu.dot_dimension_numbers<[1], [0], [0], [1], [0, 0, 1, 1], [], []>} : vector<256x512xbf16>, vector<512x128xbf16>, vector<256x128xf32> -> vector<256x128xf32>
    %c0_3 = arith.constant 0 : index
    %c0_4 = arith.constant 0 : index
    %4 = vector.load %arg3[%c0_3, %c0_4] : memref<1x128xf32, #tpu.memory_space<vmem>>, vector<1x128xf32>
    %5 = vector.broadcast %4 : vector<1x128xf32> to vector<256x128xf32>
    %6 = arith.addf %3, %5 : vector<256x128xf32>
    %cst_5 = arith.constant 0.000000e+00 : f32
    %7 = vector.broadcast %cst_5 : f32 to vector<256x128xf32>
    %8 = arith.maximumf %6, %7 : vector<256x128xf32>
    %9 = arith.truncf %8 : vector<256x128xf32> to vector<256x128xbf16>
    %c0_6 = arith.constant 0 : index
    %c0_7 = arith.constant 0 : index
    %10 = vector.load %arg4[%c0_6, %c0_7] : memref<128x512xbf16, #tpu.memory_space<vmem>>, vector<128x512xbf16>
    %cst_8 = arith.constant dense<0.000000e+00> : vector<256x512xf32>
    %11 = tpu.matmul %9, %10, %cst_8 {dimension_numbers = #tpu.dot_dimension_numbers<[1], [0], [0], [1], [0, 0, 1, 1], [], []>} : vector<256x128xbf16>, vector<128x512xbf16>, vector<256x512xf32> -> vector<256x512xf32>
    %c0_9 = arith.constant 0 : index
    %c0_10 = arith.constant 0 : index
    %12 = vector.load %arg5[%c0_9, %c0_10] : memref<1x512xf32, #tpu.memory_space<vmem>>, vector<1x512xf32>
    %13 = vector.broadcast %12 : vector<1x512xf32> to vector<256x512xf32>
    %14 = arith.addf %11, %13 : vector<256x512xf32>
    %15 = math.tanh %14 : vector<256x512xf32>
    %16 = vector.extract_strided_slice %8 {offsets = [0, 0], sizes = [256, 32], strides = [1, 1]} : vector<256x128xf32> to vector<256x32xf32>
    %c0_11 = arith.constant 0 : index
    %c0_12 = arith.constant 0 : index
    %17 = vector.load %arg7[%c0_11, %c0_12] : memref<256x32xf32, #tpu.memory_space<vmem>>, vector<256x32xf32>
    tpu.vector_store %arg7[%c0_11, %c0_12], %16 {strides = array<i32>} : memref<256x32xf32, #tpu.memory_space<vmem>>, vector<256x32xf32>,
    %18 = arith.truncf %15 : vector<256x512xf32> to vector<256x512xbf16>
    %c0_13 = arith.constant 0 : index
    %c0_14 = arith.constant 0 : index
    %19 = vector.load %arg6[%c0_13, %c0_14] : memref<256x512xbf16, #tpu.memory_space<vmem>>, vector<256x512xbf16>
    tpu.vector_store %arg6[%c0_13, %c0_14], %18 {strides = array<i32>} : memref<256x512xbf16, #tpu.memory_space<vmem>>, vector<256x512xbf16>,
    return
  }
  func.func @transform_0(%arg0: i32) -> (i32, i32) {
    %c0_i32 = arith.constant 0 : i32
    %c0_i32_0 = arith.constant 0 : i32
    return %arg0, %c0_i32 : i32, i32
  }
  func.func @transform_1(%arg0: i32) -> (i32, i32) {
    %c0_i32 = arith.constant 0 : i32
    %c0_i32_0 = arith.constant 0 : i32
    %c0_i32_1 = arith.constant 0 : i32
    return %c0_i32, %c0_i32_0 : i32, i32
  }
  func.func @transform_2(%arg0: i32) -> (i32, i32) {
    %c0_i32 = arith.constant 0 : i32
    %c0_i32_0 = arith.constant 0 : i32
    %c0_i32_1 = arith.constant 0 : i32
    return %c0_i32, %c0_i32_0 : i32, i32
  }
  func.func @transform_3(%arg0: i32) -> (i32, i32) {
    %c0_i32 = arith.constant 0 : i32
    %c0_i32_0 = arith.constant 0 : i32
    %c0_i32_1 = arith.constant 0 : i32
    return %c0_i32, %c0_i32_0 : i32, i32
  }
  func.func @transform_4(%arg0: i32) -> (i32, i32) {
    %c0_i32 = arith.constant 0 : i32
    %c0_i32_0 = arith.constant 0 : i32
    %c0_i32_1 = arith.constant 0 : i32
    return %c0_i32, %c0_i32_0 : i32, i32
  }
  func.func @transform_5(%arg0: i32) -> (i32, i32) {
    %c0_i32 = arith.constant 0 : i32
    %c0_i32_0 = arith.constant 0 : i32
    return %arg0, %c0_i32 : i32, i32
  }
  func.func @transform_6(%arg0: i32) -> (i32, i32) {
    %c0_i32 = arith.constant 0 : i32
    %c0_i32_0 = arith.constant 0 : i32
    return %arg0, %c0_i32 : i32, i32
  }
}

</mosaic_0001>

<bundles_post_ra>
// kernel: _lambda_.1
= control target key start
LH: loop header
LB: loop body
LE: loop exit
PB: predicated region body
PF: predicated region fallthrough
CT: control target
= control target key end

     0   :  { %12 = vsyncpa [#allocation3], 0  ;;  %s3371_s0 = inlined_call_operand.hbm [shape: f32[256,512], index: 0, kind: input, shape index: {}]   ;;  %s3372_s1 = inlined_call_operand.hbm [shape: bf16[512,128], index: 1, kind: input, shape index: {}]   ;;  %s3373_s2 = inlined_call_operand.vmem [shape: f32[1,128], index: 2, kind: input, shape index: {}]   ;;  %s3374_s3 = inlined_call_operand.hbm [shape: bf16[128,512], index: 3, kind: input, shape index: {}]   ;;  %s3375_s4 = inlined_call_operand.vmem [shape: f32[1,512], index: 4, kind: input, shape index: {}]   ;;  %s3376_s5 = inlined_call_operand.hbm [shape: bf16[256,512], index: 5, kind: output, shape index: {0}]   ;;  %s3377_s6 = inlined_call_operand.vmem [shape: f32[256,32], index: 6, kind: output, shape index: {1}]  }
   0x1   :  { %13 = vsyncpa [#allocation6], 0 }
   0x2   :  { %14 = vsyncpa [#allocation4], 0  ;;  %s2971_s21 = smov [#allocation5]  }
   0x3   :  { %s32_s22 = sshll.u32 %s2971_s21, 4  ;;  %s33_s22 = int_to_ptr.vmem [resolvable:$true] %s32_s22 }
   0x4   :  { %s2893_s23 = scalar_lea.vmem %s33_s22, 4096  ;;  %p2898_p1 = scmp.lt.s32.totalorder %s33_s22, %s33_s22 }
   0x5   :  { %p2894_p0 = scmp.ne.s32.totalorder %s33_s22, %s2893_s23  ;;  %p2899_p2 = scmp.lt.s32.totalorder %s2893_s23, %s2893_s23 }
   0x7   :  { %p2900_p3 = por %p2899_p2, %p2898_p1 }
   0x9   :  { %p2901_p4 = pnand %p2900_p3, %p2894_p0 }
   0xb   :  { %2904 = shalt.err (!%p2901_p4)
}
   0xc   :  { %s2972_s24 = smov 64   ;;  %s2973_s25 = smov 4  }
   0xd   :  { %38 = dma.hbm_to_vmem [thread:$0]  %s3372_s1, 4096, %s33_s22, [#allocation6], %s2972_s24, %s2972_s24, %s2973_s25  }
   0xe   :  { %s2974_s28 = smov [#allocation2]  }
   0xf   :  { %s20_s29 = sshll.u32 %s2974_s28, 4  ;;  %s21_s29 = int_to_ptr.vmem [resolvable:$true] %s20_s29 }
  0x10   :  { %s2913_s30 = scalar_lea.vmem %s21_s29, 16384  ;;  %p2918_p6 = scmp.lt.s32.totalorder %s21_s29, %s21_s29 }
  0x11   :  { %p2914_p5 = scmp.ne.s32.totalorder %s21_s29, %s2913_s30  ;;  %p2919_p7 = scmp.lt.s32.totalorder %s2913_s30, %s2913_s30 }
  0x13   :  { %p2920_p8 = por %p2919_p7, %p2918_p6 }
  0x15   :  { %p2921_p9 = pnand %p2920_p8, %p2914_p5 }
  0x17   :  { %2924 = shalt.err (!%p2921_p9)
}
  0x18   :  { %s2975_s7 = smov 512   ;;  %s2976_s8 = smov 32  }
  0x19   :  { %26 = dma.hbm_to_vmem [thread:$0]  %s3371_s0, 16384, %s21_s29, [#allocation3], %s2975_s7, %s2975_s7, %s2976_s8  }
  0x1a   :  { %s2977_s11 = smov [#allocation7]  }
  0x1b   :  { %s46_s12 = sshll.u32 %s2977_s11, 4  ;;  %s47_s12 = int_to_ptr.vmem [resolvable:$true] %s46_s12 }
  0x1c   :  { %s2933_s1 = scalar_lea.vmem %s47_s12, 4096  ;;  %p2938_p11 = scmp.lt.s32.totalorder %s47_s12, %s47_s12 }
  0x1d   :  { %p2934_p10 = scmp.ne.s32.totalorder %s47_s12, %s2933_s1  ;;  %p2939_p12 = scmp.lt.s32.totalorder %s2933_s1, %s2933_s1 }
  0x1f   :  { %p2940_p13 = por %p2939_p12, %p2938_p11 }
  0x21   :  { %p2941_p0 = pnand %p2940_p13, %p2934_p10 }
  0x23   :  { %2944 = shalt.err (!%p2941_p0)
}
  0x24   :  { %s2978_s13 = smov 256   ;;  %s2979_s14 = smov 16  }
  0x25   :  { %52 = dma.hbm_to_vmem [thread:$0]  %s3374_s3, 4096, %s47_s12, [#allocation6], %s2978_s13, %s2978_s13, %s2979_s14  }
  0x26   :  { %2965 = dma.done.wait [#allocation3], 16384  }
  0x27   :  { %2966 = vsyncadd [#allocation3], 4294950912 }
  0x28   :  { %2967 = dma.done.wait [#allocation6], 8192  }
  0x29   :  { %2968 = vsyncadd [#allocation6], 4294959104  ;;  %v2549_v0 = vld [vmem:[#allocation5 + $0x78] sm:$0xff]   ;;  %v2553_v4 = vld [vmem:[#allocation5 + $0x70] sm:$0xff]   ;;  %vm1618_vm0 = vcmask 261120  }
  0x2a   :  { %v2550_v1 = vld [vmem:[#allocation5 + $0xf8] sm:$0xff]   ;;  %2314 = vmatprep.subr.bf16.mxu0 %v2549_v0  ;;  %v2554_v5 = vld [vmem:[#allocation5 + $0xf0] sm:$0xff]   ;;  %v2557_v8 = vld [vmem:[#allocation5 + $0x68] sm:$0xff]  }
  0x2b   :  { %v2551_v2 = vld [vmem:[#allocation5 + $0x38] sm:$0xff]   ;;  %2426 = vmatprep.subr.bf16.mxu1 %v2550_v1  ;;  %v2555_v6 = vld [vmem:[#allocation5 + $0x30] sm:$0xff]   ;;  %v2558_v9 = vld [vmem:[#allocation5 + $0xe8] sm:$0xff]  }
  0x2c   :  { %v2552_v3 = vld [vmem:[#allocation5 + $0xb8] sm:$0xff]   ;;  %2315 = vmatpush3.bf16.msra.mxu0 %v2551_v2  ;;  %v2556_v7 = vld [vmem:[#allocation5 + $0xb0] sm:$0xff]   ;;  %v2559_v10 = vld [vmem:[#allocation5 + $0x28] sm:$0xff]  }
  0x2d   :  { %2427 = vmatpush3.bf16.msra.mxu1 %v2552_v3  ;;  %2316 = vmatprep.subr.bf16.mxu0 %v2553_v4  ;;  %v2560_v11 = vld [vmem:[#allocation5 + $0xa8] sm:$0xff]   ;;  %v2561_v12 = vld [vmem:[#allocation5 + $0x60] sm:$0xff]   ;;  %v2565_v16 = vld [vmem:[#allocation5 + $0x58] sm:$0xff]  }
  0x2e   :  { %2428 = vmatprep.subr.bf16.mxu1 %v2554_v5  ;;  %v2562_v13 = vld [vmem:[#allocation5 + $0xe0] sm:$0xff]   ;;  %v2566_v17 = vld [vmem:[#allocation5 + $0xd8] sm:$0xff]   ;;  %v2569_v20 = vld [vmem:[#allocation5 + $0x50] sm:$0xff]  }
  0x2f   :  { %v2563_v14 = vld [vmem:[#allocation5 + $0x20] sm:$0xff]   ;;  %v2567_v18 = vld [vmem:[#allocation5 + $0x18] sm:$0xff]   ;;  %v2570_v21 = vld [vmem:[#allocation5 + $0xd0] sm:$0xff]  }
  0x30   :  { %2317 = vmatpush3.bf16.msra.mxu0 %v2555_v6  ;;  %v2564_v15 = vld [vmem:[#allocation5 + $0xa0] sm:$0xff]   ;;  %v2568_v19 = vld [vmem:[#allocation5 + $0x98] sm:$0xff]   ;;  %v2571_v22 = vld [vmem:[#allocation5 + $0x10] sm:$0xff]  }
  0x31   :  { %2429 = vmatpush3.bf16.msra.mxu1 %v2556_v7  ;;  %2318 = vmatprep.subr.bf16.mxu0 %v2557_v8  ;;  %v2572_v23 = vld [vmem:[#allocation5 + $0x90] sm:$0xff]   ;;  %v2573_v24 = vld [vmem:[#allocation5 + $0x48] sm:$0xff]   ;;  %v2577_v28 = vld [vmem:[#allocation5 + $0x40] sm:$0xff]  }
  0x32   :  { %2430 = vmatprep.subr.bf16.mxu1 %v2558_v9  ;;  %v2574_v25 = vld [vmem:[#allocation5 + $0xc8] sm:$0xff]   ;;  %v2578_v29 = vld [vmem:[#allocation5 + $0xc0] sm:$0xff]   ;;  %v68_v34 = vld [vmem:[#allocation2 + $0x18] sm:$0xff] }
  0x33   :  { %v2575_v26 = vld [vmem:[#allocation5 + $0x8] sm:$0xff]   ;;  %v2579_v30 = vld [vmem:[#allocation5] sm:$0xff]   ;;  %v72_v36 = vld [vmem:[#allocation2 + $0x38] sm:$0xff] }
  0x34   :  { %2319 = vmatpush3.bf16.msra.mxu0 %v2559_v10  ;;  %v2576_v27 = vld [vmem:[#allocation5 + $0x88] sm:$0xff]   ;;  %v2580_v31 = vld [vmem:[#allocation5 + $0x80] sm:$0xff]   ;;  %v196_v39 = vpack.c.bf16 %v72_v36, %v68_v34  ;;  %v67_v41 = vld [vmem:[#allocation2 + $0x10] sm:$0xff] }
  0x35   :  { %2431 = vmatpush3.bf16.msra.mxu1 %v2560_v11  ;;  %2320 = vmatprep.subr.bf16.mxu0 %v2561_v12  ;;  %v66_v32 = vld [vmem:[#allocation2 + $0x8] sm:$0xff]  ;;  %v65_v37 = vld [vmem:[#allocation2] sm:$0xff]  ;;  %v71_v42 = vld [vmem:[#allocation2 + $0x30] sm:$0xff] }
  0x36   :  { %2432 = vmatprep.subr.bf16.mxu1 %v2562_v13  ;;  %v70_v33 = vld [vmem:[#allocation2 + $0x28] sm:$0xff]  ;;  %v69_v38 = vld [vmem:[#allocation2 + $0x20] sm:$0xff]  ;;  %v195_v44 = vpack.c.bf16 %v71_v42, %v67_v41  ;;  %v76_v46 = vld [vmem:[#allocation2 + $0x58] sm:$0xff]  ;;  %713 = vmatprep.mubr.bf16.mxu1 %v196_v39 }
  0x37   :  { %v194_v35 = vpack.c.bf16 %v70_v33, %v66_v32  ;;  %v193_v40 = vpack.c.bf16 %v69_v38, %v65_v37  ;;  %v74_v43 = vld [vmem:[#allocation2 + $0x48] sm:$0xff]  ;;  %v80_v47 = vld [vmem:[#allocation2 + $0x78] sm:$0xff]  ;;  %v73_v50 = vld [vmem:[#allocation2 + $0x40] sm:$0xff] }
  0x38   :  { %2321 = vmatpush3.bf16.msra.mxu0 %v2563_v14  ;;  %v78_v45 = vld [vmem:[#allocation2 + $0x68] sm:$0xff]  ;;  %v200_v49 = vpack.c.bf16 %v80_v47, %v76_v46  ;;  %v77_v51 = vld [vmem:[#allocation2 + $0x60] sm:$0xff]  ;;  %v75_v52 = vld [vmem:[#allocation2 + $0x50] sm:$0xff] }
  0x39   :  { %2433 = vmatpush3.bf16.msra.mxu1 %v2564_v15  ;;  %2322 = vmatprep.subr.bf16.mxu0 %v2565_v16  ;;  %v198_v48 = vpack.c.bf16 %v78_v45, %v74_v43  ;;  %v79_v53 = vld [vmem:[#allocation2 + $0x70] sm:$0xff]  ;;  %v82_v54 = vld [vmem:[#allocation2 + $0x88] sm:$0xff]  ;;  %v84_v56 = vld [vmem:[#allocation2 + $0x98] sm:$0xff]  ;;  %v197_v58 = vpack.c.bf16 %v77_v51, %v73_v50 }
  0x3a   :  { %2434 = vmatprep.subr.bf16.mxu1 %v2566_v17  ;;  %552 = vmatprep.mubr.bf16.mxu0 %v194_v35  ;;  %v86_v55 = vld [vmem:[#allocation2 + $0xa8] sm:$0xff]  ;;  %v88_v57 = vld [vmem:[#allocation2 + $0xb8] sm:$0xff]  ;;  %v199_v59 = vpack.c.bf16 %v79_v53, %v75_v52  ;;  %v81_v62 = vld [vmem:[#allocation2 + $0x80] sm:$0xff] }
  0x3b   :  { %v202_v60 = vpack.c.bf16 %v86_v55, %v82_v54  ;;  %v204_v61 = vpack.c.bf16 %v88_v57, %v84_v56  ;;  %v85_v63 = vld [vmem:[#allocation2 + $0xa0] sm:$0xff]  ;;  %v83_v0 = vld [vmem:[#allocation2 + $0x90] sm:$0xff]  ;;  %v90_v2 = vld [vmem:[#allocation2 + $0xc8] sm:$0xff] }
  0x3c   :  { %2323 = vmatpush3.bf16.msra.mxu0 %v2567_v18  ;;  %v87_v1 = vld [vmem:[#allocation2 + $0xb0] sm:$0xff]  ;;  %v94_v3 = vld [vmem:[#allocation2 + $0xe8] sm:$0xff]  ;;  %v92_v4 = vld [vmem:[#allocation2 + $0xd8] sm:$0xff]  ;;  %v201_v6 = vpack.c.bf16 %v85_v63, %v81_v62 }
  0x3d   :  { %2435 = vmatpush3.bf16.msra.mxu1 %v2568_v19  ;;  %2324 = vmatprep.subr.bf16.mxu0 %v2569_v20  ;;  %v96_v5 = vld [vmem:[#allocation2 + $0xf8] sm:$0xff]  ;;  %v203_v7 = vpack.c.bf16 %v87_v1, %v83_v0  ;;  %v206_v8 = vpack.c.bf16 %v94_v3, %v90_v2  ;;  %v89_v10 = vld [vmem:[#allocation2 + $0xc0] sm:$0xff]  ;;  %v91_v12 = vld [vmem:[#allocation2 + $0xd0] sm:$0xff] }
  0x3e   :  { %2436 = vmatprep.subr.bf16.mxu1 %v2570_v21  ;;  %v208_v9 = vpack.c.bf16 %v96_v5, %v92_v4  ;;  %v93_v11 = vld [vmem:[#allocation2 + $0xe0] sm:$0xff]  ;;  %v95_v13 = vld [vmem:[#allocation2 + $0xf0] sm:$0xff]  ;;  %v98_v14 = vld [vmem:[#allocation2 + $0x108] sm:$0xff] }
  0x3f   :  { %v102_v15 = vld [vmem:[#allocation2 + $0x128] sm:$0xff]  ;;  %v100_v16 = vld [vmem:[#allocation2 + $0x118] sm:$0xff]  ;;  %v205_v18 = vpack.c.bf16 %v93_v11, %v89_v10  ;;  %v207_v19 = vpack.c.bf16 %v95_v13, %v91_v12  ;;  %v105_v38 = vld [vmem:[#allocation2 + $0x140] sm:$0xff] }
  0x40   :  { %2325 = vmatpush3.bf16.msra.mxu0 %v2571_v22  ;;  %v104_v17 = vld [vmem:[#allocation2 + $0x138] sm:$0xff]  ;;  %v210_v20 = vpack.c.bf16 %v102_v15, %v98_v14  ;;  %v97_v22 = vld [vmem:[#allocation2 + $0x100] sm:$0xff]  ;;  %v111_v41 = vld [vmem:[#allocation2 + $0x170] sm:$0xff] }
  0x41   :  { %2437 = vmatpush3.bf16.msra.mxu1 %v2572_v23  ;;  %2326 = vmatprep.subr.bf16.mxu0 %v2573_v24  ;;  %v212_v21 = vpack.c.bf16 %v104_v17, %v100_v16  ;;  %v101_v23 = vld [vmem:[#allocation2 + $0x120] sm:$0xff]  ;;  %v99_v24 = vld [vmem:[#allocation2 + $0x110] sm:$0xff]  ;;  %v2584_v32 = vld [vmem:[#allocation7 + $0xe8] ss:$16 sps:$4 sm:$0xff]  }
  0x42   :  { %2438 = vmatprep.subr.bf16.mxu1 %v2574_v25  ;;  %v103_v25 = vld [vmem:[#allocation2 + $0x130] sm:$0xff]  ;;  %v2586_v33 = vld [vmem:[#allocation7 + $0xec] ss:$16 sps:$4 sm:$0xff]   ;;  %v209_v34 = vpack.c.bf16 %v101_v23, %v97_v22  ;;  %v109_v39 = vld [vmem:[#allocation2 + $0x160] sm:$0xff] }
  0x43   :  { %v211_v35 = vpack.c.bf16 %v103_v25, %v99_v24  ;;  %v114_v42 = vld [vmem:[#allocation2 + $0x188] sm:$0xff]  ;;  %v120_v45 = vld [vmem:[#allocation2 + $0x1b8] sm:$0xff]  ;;  %v2587_v46 = vld [vmem:[#allocation7 + $0xc0] ss:$16 sps:$4 sm:$0xff]   ;;  %v213_v50 = vpack.c.bf16 %v109_v39, %v105_v38 }
  0x44   :  { %2327 = vmatpush3.bf16.msra.mxu0 %v2575_v26  ;;  %v106_v26 = vld [vmem:[#allocation2 + $0x148] sm:$0xff]  ;;  %v2589_v47 = vld [vmem:[#allocation7 + $0xc4] ss:$16 sps:$4 sm:$0xff]   ;;  %v2593_v62 = vld [vmem:[#allocation7 + $0xa0] ss:$16 sps:$4 sm:$0xff]  }
  0x45   :  { %2439 = vmatpush3.bf16.msra.mxu1 %v2576_v27  ;;  %2328 = vmatprep.subr.bf16.mxu0 %v2577_v28  ;;  %v110_v27 = vld [vmem:[#allocation2 + $0x168] sm:$0xff]  ;;  %v108_v28 = vld [vmem:[#allocation2 + $0x158] sm:$0xff]  ;;  %v113_v54 = vld [vmem:[#allocation2 + $0x180] sm:$0xff] }
  0x46   :  { %2440 = vmatprep.subr.bf16.mxu1 %v2578_v29  ;;  %v112_v29 = vld [vmem:[#allocation2 + $0x178] sm:$0xff]  ;;  %v214_v36 = vpack.c.bf16 %v110_v27, %v106_v26  ;;  %v118_v43 = vld [vmem:[#allocation2 + $0x1a8] sm:$0xff]  ;;  %v117_v55 = vld [vmem:[#allocation2 + $0x1a0] sm:$0xff] }
  0x47   :  { %v216_v37 = vpack.c.bf16 %v112_v29, %v108_v28  ;;  %v218_v52 = vpack.c.bf16 %v118_v43, %v114_v42  ;;  %v115_v56 = vld [vmem:[#allocation2 + $0x190] sm:$0xff]  ;;  %v2596_v0 = vld [vmem:[#allocation7 + $0xa8] ss:$16 sps:$4 sm:$0xff]   ;;  %v2598_v1 = vld [vmem:[#allocation7 + $0xac] ss:$16 sps:$4 sm:$0xff]   ;;  %v217_v2 = vpack.c.bf16 %v117_v55, %v113_v54 }
  0x48   :  { %2329 = vmatpush3.bf16.msra.mxu0 %v2579_v30  ;;  %v2581_v30 = vld [vmem:[#allocation7 + $0xe0] ss:$16 sps:$4 sm:$0xff]   ;;  %v2595_v63 = vld [vmem:[#allocation7 + $0xa4] ss:$16 sps:$4 sm:$0xff]   ;;  %v130_v12 = vld [vmem:[#allocation2 + $0x208] sm:$0xff] }
  0x49   :  { %2441 = vmatpush3.bf16.msra.mxu1 %v2580_v31  ;;  %v2583_v31 = vld [vmem:[#allocation7 + $0xe4] ss:$16 sps:$4 sm:$0xff]   ;;  %v134_v13 = vld [vmem:[#allocation2 + $0x228] sm:$0xff]  ;;  %v132_v15 = vld [vmem:[#allocation2 + $0x218] sm:$0xff] }
  0x4a   :  { %1104 = vmatprep.subr.bf16.mxu0 %v2583_v31  ;;  %1297 = vmatprep.subr.bf16.mxu1 %v2586_v33  ;;  %v119_v57 = vld [vmem:[#allocation2 + $0x1b0] sm:$0xff]  ;;  %v2602_v14 = vld [vmem:[#allocation7 + $0x88] ss:$16 sps:$4 sm:$0xff]   ;;  %v2604_v16 = vld [vmem:[#allocation7 + $0x8c] ss:$16 sps:$4 sm:$0xff]   ;;  %v226_v24 = vpack.c.bf16 %v134_v13, %v130_v12 }
  0x4b   :  { %553 = vmatmul.mubr.bf16.vlgmr.msra.gmra.mxu0 %v193_v40  ;;  %v107_v40 = vld [vmem:[#allocation2 + $0x150] sm:$0xff]  ;;  %v219_v3 = vpack.c.bf16 %v119_v57, %v115_v56  ;;  %v136_v17 = vld [vmem:[#allocation2 + $0x238] sm:$0xff]  ;;  %v129_v28 = vld [vmem:[#allocation2 + $0x200] sm:$0xff] }
  0x4c   :  { %714 = vmatmul.mubr.bf16.vlgmr.msra.gmra.mxu1 %v195_v44  ;;  %560 = vmatprep.mubr.bf16.mxu0 %v198_v48  ;;  %v116_v44 = vld [vmem:[#allocation2 + $0x198] sm:$0xff]  ;;  %v215_v51 = vpack.c.bf16 %v111_v41, %v107_v40  ;;  %v123_v10 = vld [vmem:[#allocation2 + $0x1d0] sm:$0xff]  ;;  %v228_v25 = vpack.c.bf16 %v136_v17, %v132_v15  ;;  %v133_v29 = vld [vmem:[#allocation2 + $0x220] sm:$0xff] }
  0x4d   :  { %721 = vmatprep.mubr.bf16.mxu1 %v200_v49  ;;  %1105 = vmatpush1.bf16.msra.mxu0 %v2581_v30  ;;  %v2590_v48 = vld [vmem:[#allocation7 + $0xc8] ss:$16 sps:$4 sm:$0xff]   ;;  %v2592_v49 = vld [vmem:[#allocation7 + $0xcc] ss:$16 sps:$4 sm:$0xff]   ;;  %v220_v53 = vpack.c.bf16 %v120_v45, %v116_v44  ;;  %v127_v11 = vld [vmem:[#allocation2 + $0x1f0] sm:$0xff]  ;;  %v225_v41 = vpack.c.bf16 %v133_v29, %v129_v28 }
  0x4e   :  { %1298 = vmatpush1.bf16.msra.mxu1 %v2584_v32  ;;  %1106 = vmatprep.subr.bf16.mxu0 %v2589_v47  ;;  %v2608_v22 = vld [vmem:[#allocation7 + $0x68] ss:$16 sps:$4 sm:$0xff]   ;;  %v223_v23 = vpack.c.bf16 %v127_v11, %v123_v10  ;;  %v2611_v26 = vld [vmem:[#allocation7 + $0x40] ss:$16 sps:$4 sm:$0xff]   ;;  %v2613_v27 = vld [vmem:[#allocation7 + $0x44] ss:$16 sps:$4 sm:$0xff]  }
  0x4f   :  { %1299 = vmatprep.subr.bf16.mxu1 %v2592_v49  ;;  %v2614_v30 = vld [vmem:[#allocation7 + $0x48] ss:$16 sps:$4 sm:$0xff]   ;;  %v2616_v31 = vld [vmem:[#allocation7 + $0x4c] ss:$16 sps:$4 sm:$0xff]   ;;  %v131_v32 = vld [vmem:[#allocation2 + $0x210] sm:$0xff] }
  0x50   :  { %v135_v33 = vld [vmem:[#allocation2 + $0x230] sm:$0xff]  ;;  %v140_v38 = vld [vmem:[#allocation2 + $0x258] sm:$0xff]  ;;  %v141_v47 = vld [vmem:[#allocation2 + $0x260] sm:$0xff] }
  0x51   :  { %1107 = vmatpush1.bf16.msra.mxu0 %v2587_v46  ;;  %v144_v39 = vld [vmem:[#allocation2 + $0x278] sm:$0xff]  ;;  %v2617_v40 = vld [vmem:[#allocation7 + $0x20] ss:$16 sps:$4 sm:$0xff]   ;;  %v227_v43 = vpack.c.bf16 %v135_v33, %v131_v32  ;;  %v150_v54 = vld [vmem:[#allocation2 + $0x2a8] sm:$0xff] }
  0x52   :  { %1300 = vmatpush1.bf16.msra.mxu1 %v2590_v48  ;;  %1108 = vmatprep.subr.bf16.mxu0 %v2595_v63  ;;  %v2620_v42 = vld [vmem:[#allocation7 + $0x28] ss:$16 sps:$4 sm:$0xff]   ;;  %v232_v45 = vpack.c.bf16 %v144_v39, %v140_v38  ;;  %v137_v46 = vld [vmem:[#allocation2 + $0x240] sm:$0xff]  ;;  %v139_v48 = vld [vmem:[#allocation2 + $0x250] sm:$0xff] }
  0x53   :  { %561 = vmatmul.mubr.bf16.gmra.mxu0 %v197_v58  ;;  %v122_v58 = vld [vmem:[#allocation2 + $0x1c8] sm:$0xff]  ;;  %1301 = vmatprep.subr.bf16.mxu1 %v2598_v1  ;;  %v143_v49 = vld [vmem:[#allocation2 + $0x270] sm:$0xff]  ;;  %v148_v56 = vld [vmem:[#allocation2 + $0x298] sm:$0xff] }
  0x54   :  { %722 = vmatmul.mubr.bf16.gmra.mxu1 %v199_v59  ;;  %568 = vmatprep.mubr.bf16.mxu0 %v202_v60  ;;  %v126_v59 = vld [vmem:[#allocation2 + $0x1e8] sm:$0xff]  ;;  %v124_v60 = vld [vmem:[#allocation2 + $0x1d8] sm:$0xff]  ;;  %v149_v63 = vld [vmem:[#allocation2 + $0x2a0] sm:$0xff] }
  0x55   :  { %729 = vmatprep.mubr.bf16.mxu1 %v204_v61  ;;  %v128_v61 = vld [vmem:[#allocation2 + $0x1f8] sm:$0xff]  ;;  %v222_v4 = vpack.c.bf16 %v126_v59, %v122_v58  ;;  %1109 = vmatpush1.bf16.msra.mxu0 %v2593_v62  ;;  %v229_v58 = vpack.c.bf16 %v141_v47, %v137_v46  ;;  %v231_v59 = vpack.c.bf16 %v143_v49, %v139_v48  ;;  %v145_v62 = vld [vmem:[#allocation2 + $0x280] sm:$0xff]  ;;  %v151_v1 = vld [vmem:[#allocation2 + $0x2b0] sm:$0xff] }
  0x56   :  { %v224_v5 = vpack.c.bf16 %v128_v61, %v124_v60  ;;  %1302 = vmatpush1.bf16.msra.mxu1 %v2596_v0  ;;  %v2628_v55 = vld [vmem:[#allocation7 + $0xc] ss:$16 sps:$4 sm:$0xff]   ;;  %v147_v0 = vld [vmem:[#allocation2 + $0x290] sm:$0xff]  ;;  %v153_v10 = vld [vmem:[#allocation2 + $0x2c0] sm:$0xff] }
  0x57   :  { %1303 = vmatprep.subr.bf16.mxu1 %v2604_v16  ;;  %v152_v57 = vld [vmem:[#allocation2 + $0x2b8] sm:$0xff]  ;;  %v157_v11 = vld [vmem:[#allocation2 + $0x2e0] sm:$0xff]  ;;  %v155_v12 = vld [vmem:[#allocation2 + $0x2d0] sm:$0xff] }
  0x58   :  { %v236_v61 = vpack.c.bf16 %v152_v57, %v148_v56  ;;  %v159_v13 = vld [vmem:[#allocation2 + $0x2f0] sm:$0xff]  ;;  %v166_v15 = vld [vmem:[#allocation2 + $0x328] sm:$0xff]  ;;  %v164_v16 = vld [vmem:[#allocation2 + $0x318] sm:$0xff] }
  0x59   :  { %v168_v17 = vld [vmem:[#allocation2 + $0x338] sm:$0xff]  ;;  %v178_v38 = vld [vmem:[#allocation2 + $0x388] sm:$0xff]  ;;  %v177_v46 = vld [vmem:[#allocation2 + $0x380] sm:$0xff] }
  0x5a   :  { %1304 = vmatpush1.bf16.msra.mxu1 %v2602_v14  ;;  %v162_v14 = vld [vmem:[#allocation2 + $0x308] sm:$0xff]  ;;  %v172_v28 = vld [vmem:[#allocation2 + $0x358] sm:$0xff]  ;;  %v181_v47 = vld [vmem:[#allocation2 + $0x3a0] sm:$0xff] }
  0x5b   :  { %569 = vmatmul.mubr.bf16.gmra.mxu0 %v201_v6  ;;  %v121_v6 = vld [vmem:[#allocation2 + $0x1c0] sm:$0xff]  ;;  %v176_v29 = vld [vmem:[#allocation2 + $0x378] sm:$0xff]  ;;  %v182_v39 = vld [vmem:[#allocation2 + $0x3a8] sm:$0xff] }
  0x5c   :  { %730 = vmatmul.mubr.bf16.gmra.mxu1 %v203_v7  ;;  %576 = vmatprep.mubr.bf16.mxu0 %v206_v8  ;;  %v125_v7 = vld [vmem:[#allocation2 + $0x1e0] sm:$0xff]  ;;  %v248_v33 = vpack.c.bf16 %v176_v29, %v172_v28  ;;  %v179_v48 = vld [vmem:[#allocation2 + $0x390] sm:$0xff] }
  0x5d   :  { %737 = vmatprep.mubr.bf16.mxu1 %v208_v9  ;;  %v2599_v8 = vld [vmem:[#allocation7 + $0x80] ss:$16 sps:$4 sm:$0xff]   ;;  %v2601_v9 = vld [vmem:[#allocation7 + $0x84] ss:$16 sps:$4 sm:$0xff]  }
  0x5e   :  { %1110 = vmatprep.subr.bf16.mxu0 %v2601_v9  ;;  %v183_v49 = vld [vmem:[#allocation2 + $0x3b0] sm:$0xff] }
  0x5f   :  { %1111 = vmatpush1.bf16.msra.mxu0 %v2599_v8 }
  0x63   :  { %577 = vmatmul.mubr.bf16.gmra.mxu0 %v205_v18  ;;  %v2607_v18 = vld [vmem:[#allocation7 + $0x64] ss:$16 sps:$4 sm:$0xff]  }
  0x64   :  { %738 = vmatmul.mubr.bf16.gmra.mxu1 %v207_v19  ;;  %584 = vmatprep.mubr.bf16.mxu0 %v210_v20  ;;  %v2605_v19 = vld [vmem:[#allocation7 + $0x60] ss:$16 sps:$4 sm:$0xff]   ;;  %v2610_v20 = vld [vmem:[#allocation7 + $0x6c] ss:$16 sps:$4 sm:$0xff]  }
  0x65   :  { %745 = vmatprep.mubr.bf16.mxu1 %v212_v21  ;;  %v221_v21 = vpack.c.bf16 %v125_v7, %v121_v6  ;;  %1112 = vmatprep.subr.bf16.mxu0 %v2607_v18  ;;  %v233_v6 = vpack.c.bf16 %v149_v63, %v145_v62  ;;  %v235_v7 = vpack.c.bf16 %v151_v1, %v147_v0  ;;  %v2980_v0 = vmov 0  }
  0x66   :  { %1305 = vmatprep.subr.bf16.mxu1 %v2610_v20  ;;  %1113 = vmatpush1.bf16.msra.mxu0 %v2605_v19  ;;  %v237_v18 = vpack.c.bf16 %v157_v11, %v153_v10  ;;  %v239_v19 = vpack.c.bf16 %v159_v13, %v155_v12  ;;  %v242_v20 = vpack.c.bf16 %v166_v15, %v162_v14 }
  0x67   :  { %1306 = vmatpush1.bf16.msra.mxu1 %v2608_v22  ;;  %1114 = vmatprep.subr.bf16.mxu0 %v2613_v27  ;;  %v161_v22 = vld [vmem:[#allocation2 + $0x300] sm:$0xff]  ;;  %v174_v27 = vld [vmem:[#allocation2 + $0x368] sm:$0xff] }
  0x68   :  { %1307 = vmatprep.subr.bf16.mxu1 %v2616_v31 }
  0x6a   :  { %1115 = vmatpush1.bf16.msra.mxu0 %v2611_v26  ;;  %v170_v26 = vld [vmem:[#allocation2 + $0x348] sm:$0xff] }
  0x6b   :  { %585 = vmatmul.mubr.bf16.gmra.mxu0 %v209_v34  ;;  %v138_v34 = vld [vmem:[#allocation2 + $0x248] sm:$0xff]  ;;  %1308 = vmatpush1.bf16.msra.mxu1 %v2614_v30  ;;  %v246_v32 = vpack.c.bf16 %v174_v27, %v170_v26 }
  0x6c   :  { %746 = vmatmul.mubr.bf16.gmra.mxu1 %v211_v35  ;;  %592 = vmatprep.mubr.bf16.mxu0 %v214_v36  ;;  %v2619_v35 = vld [vmem:[#allocation7 + $0x24] ss:$16 sps:$4 sm:$0xff]   ;;  %v2622_v36 = vld [vmem:[#allocation7 + $0x2c] ss:$16 sps:$4 sm:$0xff]  }
  0x6d   :  { %753 = vmatprep.mubr.bf16.mxu1 %v216_v37  ;;  %v142_v37 = vld [vmem:[#allocation2 + $0x268] sm:$0xff]  ;;  %1116 = vmatprep.subr.bf16.mxu0 %v2619_v35  ;;  %v173_v35 = vld [vmem:[#allocation2 + $0x360] sm:$0xff] }
  0x6e   :  { %v230_v44 = vpack.c.bf16 %v142_v37, %v138_v34  ;;  %1309 = vmatprep.subr.bf16.mxu1 %v2622_v36  ;;  %1117 = vmatpush1.bf16.msra.mxu0 %v2617_v40  ;;  %v169_v34 = vld [vmem:[#allocation2 + $0x340] sm:$0xff]  ;;  %v171_v36 = vld [vmem:[#allocation2 + $0x350] sm:$0xff]  ;;  %v180_v40 = vld [vmem:[#allocation2 + $0x398] sm:$0xff] }
  0x6f   :  { %1310 = vmatpush1.bf16.msra.mxu1 %v2620_v42  ;;  %v175_v37 = vld [vmem:[#allocation2 + $0x370] sm:$0xff]  ;;  %v245_v42 = vpack.c.bf16 %v173_v35, %v169_v34 }
  0x70   :  { %1311 = vmatprep.subr.bf16.mxu1 %v2628_v55  ;;  %v251_v55 = vpack.c.bf16 %v183_v49, %v179_v48 }
  0x73   :  { %593 = vmatmul.mubr.bf16.gmra.mxu0 %v213_v50  ;;  %v2623_v50 = vld [vmem:[#allocation7] ss:$16 sps:$4 sm:$0xff]  }
  0x74   :  { %754 = vmatmul.mubr.bf16.gmra.mxu1 %v215_v51  ;;  %600 = vmatprep.mubr.bf16.mxu0 %v218_v52  ;;  %v2625_v51 = vld [vmem:[#allocation7 + $0x4] ss:$16 sps:$4 sm:$0xff]   ;;  %v2626_v52 = vld [vmem:[#allocation7 + $0x8] ss:$16 sps:$4 sm:$0xff]  }
  0x75   :  { %761 = vmatprep.mubr.bf16.mxu1 %v220_v53  ;;  %v146_v53 = vld [vmem:[#allocation2 + $0x288] sm:$0xff]  ;;  %1118 = vmatprep.subr.bf16.mxu0 %v2625_v51 }
  0x76   :  { %1119 = vmatpush1.bf16.msra.mxu0 %v2623_v50  ;;  %v234_v60 = vpack.c.bf16 %v150_v54, %v146_v53  ;;  %1312 = vmatpush1.bf16.msra.mxu1 %v2626_v52  ;;  %v186_v50 = vld [vmem:[#allocation2 + $0x3c8] sm:$0xff]  ;;  %v188_v52 = vld [vmem:[#allocation2 + $0x3d8] sm:$0xff]  ;;  %v249_v54 = vpack.c.bf16 %v181_v47, %v177_v46 }
  0x77   :  { %v190_v51 = vld [vmem:[#allocation2 + $0x3e8] sm:$0xff]  ;;  %v192_v53 = vld [vmem:[#allocation2 + $0x3f8] sm:$0xff] }
  0x78   :  { %v254_v56 = vpack.c.bf16 %v190_v51, %v186_v50  ;;  %v256_v57 = vpack.c.bf16 %v192_v53, %v188_v52 }
  0x7b   :  { %601 = vmatmul.mubr.bf16.gmra.mxu0 %v217_v2  ;;  %v154_v2 = vld [vmem:[#allocation2 + $0x2c8] sm:$0xff] }
  0x7c   :  { %762 = vmatmul.mubr.bf16.gmra.mxu1 %v219_v3  ;;  %608 = vmatprep.mubr.bf16.mxu0 %v222_v4  ;;  %v158_v3 = vld [vmem:[#allocation2 + $0x2e8] sm:$0xff]  ;;  %v156_v4 = vld [vmem:[#allocation2 + $0x2d8] sm:$0xff] }
  0x7d   :  { %769 = vmatprep.mubr.bf16.mxu1 %v224_v5  ;;  %v160_v5 = vld [vmem:[#allocation2 + $0x2f8] sm:$0xff]  ;;  %v238_v8 = vpack.c.bf16 %v158_v3, %v154_v2  ;;  %v3034_v3 = vld [vmem:[%s3373_s2] ss:$0 sm:$0xff] }
  0x7e   :  { %v240_v9 = vpack.c.bf16 %v160_v5, %v156_v4 }
  0x83   :  { %609 = vmatmul.mubr.bf16.gmra.mxu0 %v221_v21  ;;  %v244_v21 = vpack.c.bf16 %v168_v17, %v164_v16 }
  0x84   :  { %770 = vmatmul.mubr.bf16.gmra.mxu1 %v223_v23  ;;  %616 = vmatprep.mubr.bf16.mxu0 %v226_v24  ;;  %v165_v23 = vld [vmem:[#allocation2 + $0x320] sm:$0xff]  ;;  %v163_v24 = vld [vmem:[#allocation2 + $0x310] sm:$0xff] }
  0x85   :  { %777 = vmatprep.mubr.bf16.mxu1 %v228_v25  ;;  %v167_v25 = vld [vmem:[#allocation2 + $0x330] sm:$0xff]  ;;  %v241_v30 = vpack.c.bf16 %v165_v23, %v161_v22 }
  0x86   :  { %v243_v31 = vpack.c.bf16 %v167_v25, %v163_v24 }
  0x8b   :  { %617 = vmatmul.mubr.bf16.gmra.mxu0 %v225_v41  ;;  %v184_v41 = vld [vmem:[#allocation2 + $0x3b8] sm:$0xff] }
  0x8c   :  { %778 = vmatmul.mubr.bf16.gmra.mxu1 %v227_v43  ;;  %624 = vmatprep.mubr.bf16.mxu0 %v230_v44  ;;  %v247_v43 = vpack.c.bf16 %v175_v37, %v171_v36  ;;  %v250_v44 = vpack.c.bf16 %v182_v39, %v178_v38 }
  0x8d   :  { %785 = vmatprep.mubr.bf16.mxu1 %v232_v45  ;;  %v252_v45 = vpack.c.bf16 %v184_v41, %v180_v40 }
  0x93   :  { %625 = vmatmul.mubr.bf16.gmra.mxu0 %v229_v58  ;;  %v185_v58 = vld [vmem:[#allocation2 + $0x3c0] sm:$0xff] }
  0x94   :  { %786 = vmatmul.mubr.bf16.gmra.mxu1 %v231_v59  ;;  %632 = vmatprep.mubr.bf16.mxu0 %v234_v60  ;;  %v189_v59 = vld [vmem:[#allocation2 + $0x3e0] sm:$0xff]  ;;  %v187_v60 = vld [vmem:[#allocation2 + $0x3d0] sm:$0xff] }
  0x95   :  { %793 = vmatprep.mubr.bf16.mxu1 %v236_v61  ;;  %v191_v61 = vld [vmem:[#allocation2 + $0x3f0] sm:$0xff]  ;;  %v253_v62 = vpack.c.bf16 %v189_v59, %v185_v58 }
  0x96   :  { %v255_v63 = vpack.c.bf16 %v191_v61, %v187_v60 }
  0x9b   :  { %633 = vmatmul.mubr.bf16.gmra.mxu0 %v233_v6 }
  0x9c   :  { %794 = vmatmul.mubr.bf16.gmra.mxu1 %v235_v7  ;;  %640 = vmatprep.mubr.bf16.mxu0 %v238_v8 }
  0x9d   :  { %801 = vmatprep.mubr.bf16.mxu1 %v240_v9 }
  0xa3   :  { %641 = vmatmul.mubr.bf16.gmra.mxu0 %v237_v18 }
  0xa4   :  { %802 = vmatmul.mubr.bf16.gmra.mxu1 %v239_v19  ;;  %648 = vmatprep.mubr.bf16.mxu0 %v242_v20 }
  0xa5   :  { %809 = vmatprep.mubr.bf16.mxu1 %v244_v21 }
  0xab   :  { %649 = vmatmul.mubr.bf16.gmra.mxu0 %v241_v30 }
  0xac   :  { %810 = vmatmul.mubr.bf16.gmra.mxu1 %v243_v31  ;;  %656 = vmatprep.mubr.bf16.mxu0 %v246_v32 }
  0xad   :  { %817 = vmatprep.mubr.bf16.mxu1 %v248_v33 }
  0xb3   :  { %657 = vmatmul.mubr.bf16.gmra.mxu0 %v245_v42 }
  0xb4   :  { %818 = vmatmul.mubr.bf16.gmra.mxu1 %v247_v43  ;;  %664 = vmatprep.mubr.bf16.mxu0 %v250_v44 }
  0xb5   :  { %825 = vmatprep.mubr.bf16.mxu1 %v252_v45 }
  0xbb   :  { %665 = vmatmul.mubr.bf16.gmra.mxu0 %v249_v54 }
  0xbc   :  { %826 = vmatmul.mubr.bf16.gmra.mxu1 %v251_v55  ;;  %672 = vmatprep.mubr.bf16.mxu0 %v254_v56 }
  0xbd   :  { %833 = vmatprep.mubr.bf16.mxu1 %v256_v57 }
  0xc3   :  { %673 = vmatmul.mubr.bf16.gmra.mxu0 %v253_v62 }
  0xc4   :  { %834 = vmatmul.mubr.bf16.gmra.mxu1 %v255_v63  ;;  %1136 = vmatprep.mubr.bf16.mxu0 %v2980_v0 }
  0xc5   :  { %1329 = vmatprep.mubr.bf16.mxu1 %v2980_v0 }
 0x10b   :  { %v2330_v1 = vpop.f32.mrf.mxu0 }
 0x10c   :  { %v2442_v2 = vpop.f32.mrf.mxu1 }
 0x10d   :  { %v2331_v4 = vpop.f32.mrf.mxu0 }
 0x10e   :  { %v2332_v5 = vadd.f32 %v2331_v4, %v2330_v1  ;;  %v2443_v6 = vpop.f32.mrf.mxu1 }
 0x10f   :  { %v2333_v7 = vpop.f32.mrf.mxu0  ;;  %v2444_v9 = vadd.f32 %v2443_v6, %v2442_v2 }
 0x110   :  { %v555_v8 = vadd.f32 %v2332_v5, %v3034_v3  ;;  %v2445_v10 = vpop.f32.mrf.mxu1 }
 0x111   :  { %v2334_v11 = vpop.f32.mrf.mxu0 }
 0x112   :  { %v716_v12 = vadd.f32 %v2444_v9, %v555_v8  ;;  %v2335_v13 = vadd.f32 %v2334_v11, %v2333_v7  ;;  %v2446_v14 = vpop.f32.mrf.mxu1 }
 0x113   :  { %v2336_v15 = vpop.f32.mrf.mxu0  ;;  %v2447_v18 = vadd.f32 %v2446_v14, %v2445_v10 }
 0x114   :  { %v842_v16 = vmax.f32 %v716_v12, 0.0  ;;  %v558_v17 = vadd.f32 %v2335_v13, %v3034_v3  ;;  %v2448_v19 = vpop.f32.mrf.mxu1 }
 0x115   :  { %v2337_v20 = vpop.f32.mrf.mxu0 }
 0x116   :  { %1619 = vst.msk [vmem:[%s3377_s6] sm:$0xff] %vm1618_vm0, %v842_v16  ;;  %v719_v21 = vadd.f32 %v2447_v18, %v558_v17  ;;  %v2338_v22 = vadd.f32 %v2337_v20, %v2336_v15  ;;  %v2449_v23 = vpop.f32.mrf.mxu1 }
 0x117   :  { %v2339_v24 = vpop.f32.mrf.mxu0  ;;  %v2450_v27 = vadd.f32 %v2449_v23, %v2448_v19 }
 0x118   :  { %v843_v25 = vmax.f32 %v719_v21, 0.0  ;;  %v563_v26 = vadd.f32 %v2338_v22, %v3034_v3  ;;  %v2451_v28 = vpop.f32.mrf.mxu1 }
 0x119   :  { %v2340_v29 = vpop.f32.mrf.mxu0 }
 0x11a   :  { %v874_v30 = vpack.c.bf16 %v843_v25, %v842_v16  ;;  %1620 = vst.msk [vmem:[%s3377_s6 + $0x8] sm:$0xff] %vm1618_vm0, %v843_v25  ;;  %v724_v31 = vadd.f32 %v2450_v27, %v563_v26  ;;  %v2341_v32 = vadd.f32 %v2340_v29, %v2339_v24  ;;  %v2452_v33 = vpop.f32.mrf.mxu1 }
 0x11b   :  { %v2342_v34 = vpop.f32.mrf.mxu0  ;;  %v2453_v37 = vadd.f32 %v2452_v33, %v2451_v28 }
 0x11c   :  { %v844_v35 = vmax.f32 %v724_v31, 0.0  ;;  %v566_v36 = vadd.f32 %v2341_v32, %v3034_v3  ;;  %v2454_v38 = vpop.f32.mrf.mxu1  ;;  %1137 = vmatmul.mubr.bf16.vlgmr.msra.gmra.mxu0 %v874_v30  ;;  %1330 = vmatmul.mubr.bf16.vlgmr.msra.gmra.mxu1 %v874_v30 }
 0x11d   :  { %v2343_v39 = vpop.f32.mrf.mxu0  ;;  %1146 = vmatprep.mubr.bf16.mxu0 %v2980_v0  ;;  %1339 = vmatprep.mubr.bf16.mxu1 %v2980_v0 }
 0x11e   :  { %1621 = vst.msk [vmem:[%s3377_s6 + $0x10] sm:$0xff] %vm1618_vm0, %v844_v35  ;;  %v727_v40 = vadd.f32 %v2453_v37, %v566_v36  ;;  %v2344_v41 = vadd.f32 %v2343_v39, %v2342_v34  ;;  %v2455_v42 = vpop.f32.mrf.mxu1 }
 0x11f   :  { %v2345_v43 = vpop.f32.mrf.mxu0  ;;  %v2456_v46 = vadd.f32 %v2455_v42, %v2454_v38 }
 0x120   :  { %v845_v44 = vmax.f32 %v727_v40, 0.0  ;;  %v571_v45 = vadd.f32 %v2344_v41, %v3034_v3  ;;  %v2457_v47 = vpop.f32.mrf.mxu1 }
 0x121   :  { %v2346_v48 = vpop.f32.mrf.mxu0 }
 0x122   :  { %1622 = vst.msk [vmem:[%s3377_s6 + $0x18] sm:$0xff] %vm1618_vm0, %v845_v44  ;;  %v732_v49 = vadd.f32 %v2456_v46, %v571_v45  ;;  %v2347_v50 = vadd.f32 %v2346_v48, %v2345_v43  ;;  %v2458_v51 = vpop.f32.mrf.mxu1  ;;  %v875_v52 = vpack.c.bf16 %v845_v44, %v844_v35 }
 0x123   :  { %v2348_v53 = vpop.f32.mrf.mxu0  ;;  %v2459_v56 = vadd.f32 %v2458_v51, %v2457_v47 }
 0x124   :  { %v846_v54 = vmax.f32 %v732_v49, 0.0  ;;  %v574_v55 = vadd.f32 %v2347_v50, %v3034_v3  ;;  %v2460_v57 = vpop.f32.mrf.mxu1  ;;  %1147 = vmatmul.mubr.bf16.gmra.mxu0 %v875_v52  ;;  %1340 = vmatmul.mubr.bf16.gmra.mxu1 %v875_v52 }
 0x125   :  { %v2349_v58 = vpop.f32.mrf.mxu0  ;;  %1156 = vmatprep.mubr.bf16.mxu0 %v2980_v0  ;;  %1349 = vmatprep.mubr.bf16.mxu1 %v2980_v0 }
 0x126   :  { %1623 = vst.msk [vmem:[%s3377_s6 + $0x20] sm:$0xff] %vm1618_vm0, %v846_v54  ;;  %v735_v59 = vadd.f32 %v2459_v56, %v574_v55  ;;  %v2350_v60 = vadd.f32 %v2349_v58, %v2348_v53  ;;  %v2461_v61 = vpop.f32.mrf.mxu1 }
 0x127   :  { %v2351_v62 = vpop.f32.mrf.mxu0  ;;  %v2462_v2 = vadd.f32 %v2461_v61, %v2460_v57 }
 0x128   :  { %v847_v63 = vmax.f32 %v735_v59, 0.0  ;;  %v579_v1 = vadd.f32 %v2350_v60, %v3034_v3  ;;  %v2463_v4 = vpop.f32.mrf.mxu1 }
 0x129   :  { %v2352_v5 = vpop.f32.mrf.mxu0 }
 0x12a   :  { %1624 = vst.msk [vmem:[%s3377_s6 + $0x28] sm:$0xff] %vm1618_vm0, %v847_v63  ;;  %v740_v6 = vadd.f32 %v2462_v2, %v579_v1  ;;  %v2353_v7 = vadd.f32 %v2352_v5, %v2351_v62  ;;  %v2464_v8 = vpop.f32.mrf.mxu1  ;;  %v876_v9 = vpack.c.bf16 %v847_v63, %v846_v54 }
 0x12b   :  { %v2354_v10 = vpop.f32.mrf.mxu0  ;;  %v2465_v13 = vadd.f32 %v2464_v8, %v2463_v4 }
 0x12c   :  { %v848_v11 = vmax.f32 %v740_v6, 0.0  ;;  %v582_v12 = vadd.f32 %v2353_v7, %v3034_v3  ;;  %v2466_v14 = vpop.f32.mrf.mxu1  ;;  %1157 = vmatmul.mubr.bf16.gmra.mxu0 %v876_v9  ;;  %1350 = vmatmul.mubr.bf16.gmra.mxu1 %v876_v9 }
 0x12d   :  { %v2355_v15 = vpop.f32.mrf.mxu0  ;;  %1166 = vmatprep.mubr.bf16.mxu0 %v2980_v0  ;;  %1359 = vmatprep.mubr.bf16.mxu1 %v2980_v0 }
 0x12e   :  { %1625 = vst.msk [vmem:[%s3377_s6 + $0x30] sm:$0xff] %vm1618_vm0, %v848_v11  ;;  %v743_v16 = vadd.f32 %v2465_v13, %v582_v12  ;;  %v2356_v17 = vadd.f32 %v2355_v15, %v2354_v10  ;;  %v2467_v18 = vpop.f32.mrf.mxu1 }
 0x12f   :  { %v2357_v19 = vpop.f32.mrf.mxu0  ;;  %v2468_v22 = vadd.f32 %v2467_v18, %v2466_v14 }
 0x130   :  { %v849_v20 = vmax.f32 %v743_v16, 0.0  ;;  %v587_v21 = vadd.f32 %v2356_v17, %v3034_v3  ;;  %v2469_v23 = vpop.f32.mrf.mxu1 }
 0x131   :  { %v2358_v24 = vpop.f32.mrf.mxu0 }
 0x132   :  { %1626 = vst.msk [vmem:[%s3377_s6 + $0x38] sm:$0xff] %vm1618_vm0, %v849_v20  ;;  %v748_v25 = vadd.f32 %v2468_v22, %v587_v21  ;;  %v2359_v26 = vadd.f32 %v2358_v24, %v2357_v19  ;;  %v2470_v27 = vpop.f32.mrf.mxu1  ;;  %v877_v28 = vpack.c.bf16 %v849_v20, %v848_v11 }
 0x133   :  { %v2360_v29 = vpop.f32.mrf.mxu0  ;;  %v2471_v32 = vadd.f32 %v2470_v27, %v2469_v23 }
 0x134   :  { %v850_v30 = vmax.f32 %v748_v25, 0.0  ;;  %v590_v31 = vadd.f32 %v2359_v26, %v3034_v3  ;;  %v2472_v33 = vpop.f32.mrf.mxu1  ;;  %1167 = vmatmul.mubr.bf16.gmra.mxu0 %v877_v28  ;;  %1360 = vmatmul.mubr.bf16.gmra.mxu1 %v877_v28 }
 0x135   :  { %v2361_v34 = vpop.f32.mrf.mxu0  ;;  %1176 = vmatprep.mubr.bf16.mxu0 %v2980_v0  ;;  %1369 = vmatprep.mubr.bf16.mxu1 %v2980_v0 }
 0x136   :  { %1627 = vst.msk [vmem:[%s3377_s6 + $0x40] sm:$0xff] %vm1618_vm0, %v850_v30  ;;  %v751_v35 = vadd.f32 %v2471_v32, %v590_v31  ;;  %v2362_v36 = vadd.f32 %v2361_v34, %v2360_v29  ;;  %v2473_v37 = vpop.f32.mrf.mxu1 }
 0x137   :  { %v2363_v38 = vpop.f32.mrf.mxu0  ;;  %v2474_v41 = vadd.f32 %v2473_v37, %v2472_v33 }
 0x138   :  { %v851_v39 = vmax.f32 %v751_v35, 0.0  ;;  %v595_v40 = vadd.f32 %v2362_v36, %v3034_v3  ;;  %v2475_v42 = vpop.f32.mrf.mxu1 }
 0x139   :  { %v2364_v43 = vpop.f32.mrf.mxu0 }
 0x13a   :  { %1628 = vst.msk [vmem:[%s3377_s6 + $0x48] sm:$0xff] %vm1618_vm0, %v851_v39  ;;  %v756_v44 = vadd.f32 %v2474_v41, %v595_v40  ;;  %v2365_v45 = vadd.f32 %v2364_v43, %v2363_v38  ;;  %v2476_v46 = vpop.f32.mrf.mxu1  ;;  %v878_v47 = vpack.c.bf16 %v851_v39, %v850_v30 }
 0x13b   :  { %v2366_v48 = vpop.f32.mrf.mxu0  ;;  %v2477_v51 = vadd.f32 %v2476_v46, %v2475_v42 }
 0x13c   :  { %v852_v49 = vmax.f32 %v756_v44, 0.0  ;;  %v598_v50 = vadd.f32 %v2365_v45, %v3034_v3  ;;  %v2478_v52 = vpop.f32.mrf.mxu1  ;;  %1177 = vmatmul.mubr.bf16.gmra.mxu0 %v878_v47  ;;  %1370 = vmatmul.mubr.bf16.gmra.mxu1 %v878_v47 }
 0x13d   :  { %v2367_v53 = vpop.f32.mrf.mxu0  ;;  %1186 = vmatprep.mubr.bf16.mxu0 %v2980_v0  ;;  %1379 = vmatprep.mubr.bf16.mxu1 %v2980_v0 }
 0x13e   :  { %1629 = vst.msk [vmem:[%s3377_s6 + $0x50] sm:$0xff] %vm1618_vm0, %v852_v49  ;;  %v759_v54 = vadd.f32 %v2477_v51, %v598_v50  ;;  %v2368_v55 = vadd.f32 %v2367_v53, %v2366_v48  ;;  %v2479_v56 = vpop.f32.mrf.mxu1 }
 0x13f   :  { %v2369_v57 = vpop.f32.mrf.mxu0  ;;  %v2480_v60 = vadd.f32 %v2479_v56, %v2478_v52 }
 0x140   :  { %v853_v58 = vmax.f32 %v759_v54, 0.0  ;;  %v603_v59 = vadd.f32 %v2368_v55, %v3034_v3  ;;  %v2481_v61 = vpop.f32.mrf.mxu1 }
 0x141   :  { %v2370_v62 = vpop.f32.mrf.mxu0 }
 0x142   :  { %1630 = vst.msk [vmem:[%s3377_s6 + $0x58] sm:$0xff] %vm1618_vm0, %v853_v58  ;;  %v764_v63 = vadd.f32 %v2480_v60, %v603_v59  ;;  %v2371_v1 = vadd.f32 %v2370_v62, %v2369_v57  ;;  %v2482_v2 = vpop.f32.mrf.mxu1  ;;  %v879_v4 = vpack.c.bf16 %v853_v58, %v852_v49 }
 0x143   :  { %v2372_v5 = vpop.f32.mrf.mxu0  ;;  %v2483_v8 = vadd.f32 %v2482_v2, %v2481_v61 }
 0x144   :  { %v854_v6 = vmax.f32 %v764_v63, 0.0  ;;  %v606_v7 = vadd.f32 %v2371_v1, %v3034_v3  ;;  %v2484_v9 = vpop.f32.mrf.mxu1  ;;  %1187 = vmatmul.mubr.bf16.gmra.mxu0 %v879_v4  ;;  %1380 = vmatmul.mubr.bf16.gmra.mxu1 %v879_v4 }
 0x145   :  { %v2373_v10 = vpop.f32.mrf.mxu0  ;;  %1196 = vmatprep.mubr.bf16.mxu0 %v2980_v0  ;;  %1389 = vmatprep.mubr.bf16.mxu1 %v2980_v0 }
 0x146   :  { %1631 = vst.msk [vmem:[%s3377_s6 + $0x60] sm:$0xff] %vm1618_vm0, %v854_v6  ;;  %v767_v11 = vadd.f32 %v2483_v8, %v606_v7  ;;  %v2374_v12 = vadd.f32 %v2373_v10, %v2372_v5  ;;  %v2485_v13 = vpop.f32.mrf.mxu1 }
 0x147   :  { %v2375_v14 = vpop.f32.mrf.mxu0  ;;  %v2486_v17 = vadd.f32 %v2485_v13, %v2484_v9 }
 0x148   :  { %v855_v15 = vmax.f32 %v767_v11, 0.0  ;;  %v611_v16 = vadd.f32 %v2374_v12, %v3034_v3  ;;  %v2487_v18 = vpop.f32.mrf.mxu1 }
 0x149   :  { %v2376_v19 = vpop.f32.mrf.mxu0 }
 0x14a   :  { %1632 = vst.msk [vmem:[%s3377_s6 + $0x68] sm:$0xff] %vm1618_vm0, %v855_v15  ;;  %v772_v20 = vadd.f32 %v2486_v17, %v611_v16  ;;  %v2377_v21 = vadd.f32 %v2376_v19, %v2375_v14  ;;  %v2488_v22 = vpop.f32.mrf.mxu1  ;;  %v880_v23 = vpack.c.bf16 %v855_v15, %v854_v6 }
 0x14b   :  { %v2378_v24 = vpop.f32.mrf.mxu0  ;;  %v2489_v27 = vadd.f32 %v2488_v22, %v2487_v18 }
 0x14c   :  { %v856_v25 = vmax.f32 %v772_v20, 0.0  ;;  %v614_v26 = vadd.f32 %v2377_v21, %v3034_v3  ;;  %v2490_v28 = vpop.f32.mrf.mxu1  ;;  %1197 = vmatmul.mubr.bf16.gmra.mxu0 %v880_v23  ;;  %1390 = vmatmul.mubr.bf16.gmra.mxu1 %v880_v23 }
 0x14d   :  { %v2379_v29 = vpop.f32.mrf.mxu0  ;;  %1206 = vmatprep.mubr.bf16.mxu0 %v2980_v0  ;;  %1399 = vmatprep.mubr.bf16.mxu1 %v2980_v0 }
 0x14e   :  { %1633 = vst.msk [vmem:[%s3377_s6 + $0x70] sm:$0xff] %vm1618_vm0, %v856_v25  ;;  %v775_v30 = vadd.f32 %v2489_v27, %v614_v26  ;;  %v2380_v31 = vadd.f32 %v2379_v29, %v2378_v24  ;;  %v2491_v32 = vpop.f32.mrf.mxu1 }
 0x14f   :  { %v2381_v33 = vpop.f32.mrf.mxu0  ;;  %v2492_v36 = vadd.f32 %v2491_v32, %v2490_v28 }
 0x150   :  { %v857_v34 = vmax.f32 %v775_v30, 0.0  ;;  %v619_v35 = vadd.f32 %v2380_v31, %v3034_v3  ;;  %v2493_v37 = vpop.f32.mrf.mxu1 }
 0x151   :  { %v2382_v38 = vpop.f32.mrf.mxu0 }
 0x152   :  { %1634 = vst.msk [vmem:[%s3377_s6 + $0x78] sm:$0xff] %vm1618_vm0, %v857_v34  ;;  %v780_v39 = vadd.f32 %v2492_v36, %v619_v35  ;;  %v2383_v40 = vadd.f32 %v2382_v38, %v2381_v33  ;;  %v2494_v41 = vpop.f32.mrf.mxu1  ;;  %v881_v42 = vpack.c.bf16 %v857_v34, %v856_v25 }
 0x153   :  { %v2384_v43 = vpop.f32.mrf.mxu0  ;;  %v2495_v46 = vadd.f32 %v2494_v41, %v2493_v37 }
 0x154   :  { %v858_v44 = vmax.f32 %v780_v39, 0.0  ;;  %v622_v45 = vadd.f32 %v2383_v40, %v3034_v3  ;;  %v2496_v47 = vpop.f32.mrf.mxu1  ;;  %1207 = vmatmul.mubr.bf16.gmra.mxu0 %v881_v42  ;;  %1400 = vmatmul.mubr.bf16.gmra.mxu1 %v881_v42 }
 0x155   :  { %v2385_v48 = vpop.f32.mrf.mxu0  ;;  %1216 = vmatprep.mubr.bf16.mxu0 %v2980_v0  ;;  %1409 = vmatprep.mubr.bf16.mxu1 %v2980_v0 }
 0x156   :  { %1635 = vst.msk [vmem:[%s3377_s6 + $0x80] sm:$0xff] %vm1618_vm0, %v858_v44  ;;  %v783_v49 = vadd.f32 %v2495_v46, %v622_v45  ;;  %v2386_v50 = vadd.f32 %v2385_v48, %v2384_v43  ;;  %v2497_v51 = vpop.f32.mrf.mxu1 }
 0x157   :  { %v2387_v52 = vpop.f32.mrf.mxu0  ;;  %v2498_v55 = vadd.f32 %v2497_v51, %v2496_v47 }
 0x158   :  { %v859_v53 = vmax.f32 %v783_v49, 0.0  ;;  %v627_v54 = vadd.f32 %v2386_v50, %v3034_v3  ;;  %v2499_v56 = vpop.f32.mrf.mxu1 }
 0x159   :  { %v2388_v57 = vpop.f32.mrf.mxu0 }
 0x15a   :  { %1636 = vst.msk [vmem:[%s3377_s6 + $0x88] sm:$0xff] %vm1618_vm0, %v859_v53  ;;  %v788_v58 = vadd.f32 %v2498_v55, %v627_v54  ;;  %v2389_v59 = vadd.f32 %v2388_v57, %v2387_v52  ;;  %v2500_v60 = vpop.f32.mrf.mxu1  ;;  %v882_v61 = vpack.c.bf16 %v859_v53, %v858_v44 }
 0x15b   :  { %v2390_v62 = vpop.f32.mrf.mxu0  ;;  %v2501_v2 = vadd.f32 %v2500_v60, %v2499_v56 }
 0x15c   :  { %v860_v63 = vmax.f32 %v788_v58, 0.0  ;;  %v630_v1 = vadd.f32 %v2389_v59, %v3034_v3  ;;  %v2502_v4 = vpop.f32.mrf.mxu1  ;;  %1217 = vmatmul.mubr.bf16.gmra.mxu0 %v882_v61  ;;  %1410 = vmatmul.mubr.bf16.gmra.mxu1 %v882_v61 }
 0x15d   :  { %v2391_v5 = vpop.f32.mrf.mxu0  ;;  %1226 = vmatprep.mubr.bf16.mxu0 %v2980_v0  ;;  %1419 = vmatprep.mubr.bf16.mxu1 %v2980_v0 }
 0x15e   :  { %1637 = vst.msk [vmem:[%s3377_s6 + $0x90] sm:$0xff] %vm1618_vm0, %v860_v63  ;;  %v791_v6 = vadd.f32 %v2501_v2, %v630_v1  ;;  %v2392_v7 = vadd.f32 %v2391_v5, %v2390_v62  ;;  %v2503_v8 = vpop.f32.mrf.mxu1 }
 0x15f   :  { %v2393_v9 = vpop.f32.mrf.mxu0  ;;  %v2504_v12 = vadd.f32 %v2503_v8, %v2502_v4 }
 0x160   :  { %v861_v10 = vmax.f32 %v791_v6, 0.0  ;;  %v635_v11 = vadd.f32 %v2392_v7, %v3034_v3  ;;  %v2505_v13 = vpop.f32.mrf.mxu1 }
 0x161   :  { %v2394_v14 = vpop.f32.mrf.mxu0 }
 0x162   :  { %1638 = vst.msk [vmem:[%s3377_s6 + $0x98] sm:$0xff] %vm1618_vm0, %v861_v10  ;;  %v796_v15 = vadd.f32 %v2504_v12, %v635_v11  ;;  %v2395_v16 = vadd.f32 %v2394_v14, %v2393_v9  ;;  %v2506_v17 = vpop.f32.mrf.mxu1  ;;  %v883_v18 = vpack.c.bf16 %v861_v10, %v860_v63 }
 0x163   :  { %v2396_v19 = vpop.f32.mrf.mxu0  ;;  %v2507_v22 = vadd.f32 %v2506_v17, %v2505_v13 }
 0x164   :  { %v862_v20 = vmax.f32 %v796_v15, 0.0  ;;  %v638_v21 = vadd.f32 %v2395_v16, %v3034_v3  ;;  %v2508_v23 = vpop.f32.mrf.mxu1  ;;  %1227 = vmatmul.mubr.bf16.gmra.mxu0 %v883_v18  ;;  %1420 = vmatmul.mubr.bf16.gmra.mxu1 %v883_v18 }
 0x165   :  { %v2397_v24 = vpop.f32.mrf.mxu0  ;;  %1236 = vmatprep.mubr.bf16.mxu0 %v2980_v0  ;;  %1429 = vmatprep.mubr.bf16.mxu1 %v2980_v0 }
 0x166   :  { %1639 = vst.msk [vmem:[%s3377_s6 + $0xa0] sm:$0xff] %vm1618_vm0, %v862_v20  ;;  %v799_v25 = vadd.f32 %v2507_v22, %v638_v21  ;;  %v2398_v26 = vadd.f32 %v2397_v24, %v2396_v19  ;;  %v2509_v27 = vpop.f32.mrf.mxu1 }
 0x167   :  { %v2399_v28 = vpop.f32.mrf.mxu0  ;;  %v2510_v31 = vadd.f32 %v2509_v27, %v2508_v23 }
 0x168   :  { %v863_v29 = vmax.f32 %v799_v25, 0.0  ;;  %v643_v30 = vadd.f32 %v2398_v26, %v3034_v3  ;;  %v2511_v32 = vpop.f32.mrf.mxu1 }
 0x169   :  { %v2400_v33 = vpop.f32.mrf.mxu0 }
 0x16a   :  { %1640 = vst.msk [vmem:[%s3377_s6 + $0xa8] sm:$0xff] %vm1618_vm0, %v863_v29  ;;  %v804_v34 = vadd.f32 %v2510_v31, %v643_v30  ;;  %v2401_v35 = vadd.f32 %v2400_v33, %v2399_v28  ;;  %v2512_v36 = vpop.f32.mrf.mxu1  ;;  %v884_v37 = vpack.c.bf16 %v863_v29, %v862_v20 }
 0x16b   :  { %v2402_v38 = vpop.f32.mrf.mxu0  ;;  %v2513_v41 = vadd.f32 %v2512_v36, %v2511_v32 }
 0x16c   :  { %v864_v39 = vmax.f32 %v804_v34, 0.0  ;;  %v646_v40 = vadd.f32 %v2401_v35, %v3034_v3  ;;  %v2514_v42 = vpop.f32.mrf.mxu1  ;;  %1237 = vmatmul.mubr.bf16.gmra.mxu0 %v884_v37  ;;  %1430 = vmatmul.mubr.bf16.gmra.mxu1 %v884_v37 }
 0x16d   :  { %v2403_v43 = vpop.f32.mrf.mxu0  ;;  %1246 = vmatprep.mubr.bf16.mxu0 %v2980_v0  ;;  %1439 = vmatprep.mubr.bf16.mxu1 %v2980_v0 }
 0x16e   :  { %1641 = vst.msk [vmem:[%s3377_s6 + $0xb0] sm:$0xff] %vm1618_vm0, %v864_v39  ;;  %v807_v44 = vadd.f32 %v2513_v41, %v646_v40  ;;  %v2404_v45 = vadd.f32 %v2403_v43, %v2402_v38  ;;  %v2515_v46 = vpop.f32.mrf.mxu1 }
 0x16f   :  { %v2405_v47 = vpop.f32.mrf.mxu0  ;;  %v2516_v50 = vadd.f32 %v2515_v46, %v2514_v42 }
 0x170   :  { %v865_v48 = vmax.f32 %v807_v44, 0.0  ;;  %v651_v49 = vadd.f32 %v2404_v45, %v3034_v3  ;;  %v2517_v51 = vpop.f32.mrf.mxu1 }
 0x171   :  { %v2406_v52 = vpop.f32.mrf.mxu0 }
 0x172   :  { %1642 = vst.msk [vmem:[%s3377_s6 + $0xb8] sm:$0xff] %vm1618_vm0, %v865_v48  ;;  %v812_v53 = vadd.f32 %v2516_v50, %v651_v49  ;;  %v2407_v54 = vadd.f32 %v2406_v52, %v2405_v47  ;;  %v2518_v55 = vpop.f32.mrf.mxu1  ;;  %v885_v56 = vpack.c.bf16 %v865_v48, %v864_v39 }
 0x173   :  { %v2408_v57 = vpop.f32.mrf.mxu0  ;;  %v2519_v60 = vadd.f32 %v2518_v55, %v2517_v51 }
 0x174   :  { %v866_v58 = vmax.f32 %v812_v53, 0.0  ;;  %v654_v59 = vadd.f32 %v2407_v54, %v3034_v3  ;;  %v2520_v61 = vpop.f32.mrf.mxu1  ;;  %1247 = vmatmul.mubr.bf16.gmra.mxu0 %v885_v56  ;;  %1440 = vmatmul.mubr.bf16.gmra.mxu1 %v885_v56 }
 0x175   :  { %v2409_v62 = vpop.f32.mrf.mxu0  ;;  %1256 = vmatprep.mubr.bf16.mxu0 %v2980_v0  ;;  %1449 = vmatprep.mubr.bf16.mxu1 %v2980_v0 }
 0x176   :  { %1643 = vst.msk [vmem:[%s3377_s6 + $0xc0] sm:$0xff] %vm1618_vm0, %v866_v58  ;;  %v815_v63 = vadd.f32 %v2519_v60, %v654_v59  ;;  %v2410_v1 = vadd.f32 %v2409_v62, %v2408_v57  ;;  %v2521_v2 = vpop.f32.mrf.mxu1 }
 0x177   :  { %v2411_v4 = vpop.f32.mrf.mxu0  ;;  %v2522_v7 = vadd.f32 %v2521_v2, %v2520_v61 }
 0x178   :  { %v867_v5 = vmax.f32 %v815_v63, 0.0  ;;  %v659_v6 = vadd.f32 %v2410_v1, %v3034_v3  ;;  %v2523_v8 = vpop.f32.mrf.mxu1 }
 0x179   :  { %v2412_v9 = vpop.f32.mrf.mxu0 }
 0x17a   :  { %v886_v10 = vpack.c.bf16 %v867_v5, %v866_v58  ;;  %1644 = vst.msk [vmem:[%s3377_s6 + $0xc8] sm:$0xff] %vm1618_vm0, %v867_v5  ;;  %v820_v11 = vadd.f32 %v2522_v7, %v659_v6  ;;  %v2413_v12 = vadd.f32 %v2412_v9, %v2411_v4  ;;  %v2524_v13 = vpop.f32.mrf.mxu1 }
 0x17b   :  { %v2414_v14 = vpop.f32.mrf.mxu0  ;;  %v2525_v17 = vadd.f32 %v2524_v13, %v2523_v8 }
 0x17c   :  { %v868_v15 = vmax.f32 %v820_v11, 0.0  ;;  %v662_v16 = vadd.f32 %v2413_v12, %v3034_v3  ;;  %v2526_v18 = vpop.f32.mrf.mxu1  ;;  %1257 = vmatmul.mubr.bf16.gmra.mxu0 %v886_v10  ;;  %1450 = vmatmul.mubr.bf16.gmra.mxu1 %v886_v10 }
 0x17d   :  { %v2415_v19 = vpop.f32.mrf.mxu0  ;;  %1266 = vmatprep.mubr.bf16.mxu0 %v2980_v0  ;;  %1459 = vmatprep.mubr.bf16.mxu1 %v2980_v0 }
 0x17e   :  { %1645 = vst.msk [vmem:[%s3377_s6 + $0xd0] sm:$0xff] %vm1618_vm0, %v868_v15  ;;  %v823_v20 = vadd.f32 %v2525_v17, %v662_v16  ;;  %v2416_v21 = vadd.f32 %v2415_v19, %v2414_v14  ;;  %v2527_v22 = vpop.f32.mrf.mxu1 }
 0x17f   :  { %v2417_v23 = vpop.f32.mrf.mxu0  ;;  %v2528_v26 = vadd.f32 %v2527_v22, %v2526_v18 }
 0x180   :  { %v869_v24 = vmax.f32 %v823_v20, 0.0  ;;  %v667_v25 = vadd.f32 %v2416_v21, %v3034_v3  ;;  %v2529_v27 = vpop.f32.mrf.mxu1 }
 0x181   :  { %v2418_v28 = vpop.f32.mrf.mxu0 }
 0x182   :  { %v887_v29 = vpack.c.bf16 %v869_v24, %v868_v15  ;;  %1646 = vst.msk [vmem:[%s3377_s6 + $0xd8] sm:$0xff] %vm1618_vm0, %v869_v24  ;;  %v828_v30 = vadd.f32 %v2528_v26, %v667_v25  ;;  %v2419_v31 = vadd.f32 %v2418_v28, %v2417_v23  ;;  %v2530_v32 = vpop.f32.mrf.mxu1 }
 0x183   :  { %v2420_v33 = vpop.f32.mrf.mxu0  ;;  %v2531_v36 = vadd.f32 %v2530_v32, %v2529_v27 }
 0x184   :  { %v870_v34 = vmax.f32 %v828_v30, 0.0  ;;  %v670_v35 = vadd.f32 %v2419_v31, %v3034_v3  ;;  %v2532_v37 = vpop.f32.mrf.mxu1  ;;  %1267 = vmatmul.mubr.bf16.gmra.mxu0 %v887_v29  ;;  %1460 = vmatmul.mubr.bf16.gmra.mxu1 %v887_v29 }
 0x185   :  { %v2421_v38 = vpop.f32.mrf.mxu0  ;;  %1276 = vmatprep.mubr.bf16.mxu0 %v2980_v0  ;;  %1469 = vmatprep.mubr.bf16.mxu1 %v2980_v0 }
 0x186   :  { %1647 = vst.msk [vmem:[%s3377_s6 + $0xe0] sm:$0xff] %vm1618_vm0, %v870_v34  ;;  %v831_v39 = vadd.f32 %v2531_v36, %v670_v35  ;;  %v2422_v40 = vadd.f32 %v2421_v38, %v2420_v33  ;;  %v2533_v41 = vpop.f32.mrf.mxu1 }
 0x187   :  { %v2423_v42 = vpop.f32.mrf.mxu0  ;;  %v2534_v45 = vadd.f32 %v2533_v41, %v2532_v37 }
 0x188   :  { %v871_v43 = vmax.f32 %v831_v39, 0.0  ;;  %v675_v44 = vadd.f32 %v2422_v40, %v3034_v3  ;;  %v2535_v46 = vpop.f32.mrf.mxu1 }
 0x189   :  { %v2424_v47 = vpop.f32.mrf.mxu0 }
 0x18a   :  { %v888_v48 = vpack.c.bf16 %v871_v43, %v870_v34  ;;  %1648 = vst.msk [vmem:[%s3377_s6 + $0xe8] sm:$0xff] %vm1618_vm0, %v871_v43  ;;  %v836_v49 = vadd.f32 %v2534_v45, %v675_v44  ;;  %v2425_v50 = vadd.f32 %v2424_v47, %v2423_v42  ;;  %v2536_v51 = vpop.f32.mrf.mxu1 }
 0x18b   :  { %v2537_v54 = vadd.f32 %v2536_v51, %v2535_v46 }
 0x18c   :  { %v872_v52 = vmax.f32 %v836_v49, 0.0  ;;  %v678_v53 = vadd.f32 %v2425_v50, %v3034_v3  ;;  %1277 = vmatmul.mubr.bf16.gmra.mxu0 %v888_v48  ;;  %1470 = vmatmul.mubr.bf16.gmra.mxu1 %v888_v48  ;;  %v924_v3 = vlaneseq }
 0x18d   :  { %1286 = vmatprep.mubr.bf16.mxu0 %v2980_v0  ;;  %1479 = vmatprep.mubr.bf16.mxu1 %v2980_v0  ;;  %v922_v0 = vld [vmem:[%s3375_s4] sm:$0xf]  ;;  %s2981_s4 = smov [#allocation8]  }
 0x18e   :  { %1649 = vst.msk [vmem:[%s3377_s6 + $0xf0] sm:$0xff] %vm1618_vm0, %v872_v52  ;;  %v839_v55 = vadd.f32 %v2537_v54, %v678_v53  ;;  %v925_v58 = vshrl.u32 %v924_v3, 7 }
 0x190   :  { %v873_v56 = vmax.f32 %v839_v55, 0.0  ;;  %v926_v59 = vsub.s32 0, %v925_v58  ;;  %v934_v60 = vsub.s32 2, %v925_v58  ;;  %v930_v61 = vsub.s32 1, %v925_v58 }
 0x191   :  { %v938_v62 = vsub.s32 3, %v925_v58 }
 0x192   :  { %v889_v57 = vpack.c.bf16 %v873_v56, %v872_v52  ;;  %1650 = vst.msk [vmem:[%s3377_s6 + $0xf8] sm:$0xff] %vm1618_vm0, %v873_v56  ;;  %v3229_v63 = vrot.slane %v922_v0, %v926_v59  ;;  %v3231_v1 = vrot.slane %v922_v0, %v934_v60  ;;  %v3233_v2 = vrot.slane %v922_v0, %v930_v61  ;;  %s2104_s6 = sshll.u32 %s2981_s4, 4  ;;  %s2105_s6 = int_to_ptr.vmem [resolvable:$true] %s2104_s6 }
 0x193   :  { %v3235_v4 = vrot.slane %v922_v0, %v938_v62  ;;  %s2945_s30 = scalar_lea.vmem %s2105_s6, 8192  ;;  %p2950_p2 = scmp.lt.s32.totalorder %s2105_s6, %s2105_s6 }
 0x194   :  { %1287 = vmatmul.mubr.bf16.gmra.mxu0 %v889_v57  ;;  %1480 = vmatmul.mubr.bf16.gmra.mxu1 %v889_v57  ;;  %p2946_p1 = scmp.ne.s32.totalorder %s2105_s6, %s2945_s30  ;;  %p2951_p3 = scmp.lt.s32.totalorder %s2945_s30, %s2945_s30 }
 0x196   :  { %p2952_p4 = por %p2951_p3, %p2950_p2 }
 0x198   :  { %p2953_p5 = pnand %p2952_p4, %p2946_p1 }
 0x1dc   :  { %v1138_v5 = vpop.f32.mrf.mxu0  ;;  %v1331_v6 = vpop.f32.mrf.mxu1 }
 0x1dd   :  { %v1139_v7 = vadd.f32 %v1138_v5, %v3229_v63  ;;  %v1332_v8 = vadd.f32 %v1331_v6, %v3231_v1 }
 0x1de   :  { %v1140_v9 = vpop.f32.mrf.mxu0  ;;  %v1333_v10 = vpop.f32.mrf.mxu1 }
 0x1df   :  { %2629 = vtanh.f32 %v1139_v7  ;;  %v1141_v11 = vadd.f32 %v1140_v9, %v3233_v2  ;;  %v1334_v12 = vadd.f32 %v1333_v10, %v3235_v4 }
 0x1e0   :  { %2631 = vtanh.f32 %v1332_v8  ;;  %v1142_v13 = vpop.f32.mrf.mxu0  ;;  %v1335_v14 = vpop.f32.mrf.mxu1 }
 0x1e1   :  { %2633 = vtanh.f32 %v1141_v11  ;;  %v1143_v15 = vadd.f32 %v1142_v13, %v3229_v63  ;;  %v1336_v16 = vadd.f32 %v1335_v14, %v3231_v1 }
 0x1e2   :  { %2635 = vtanh.f32 %v1334_v12  ;;  %v1144_v17 = vpop.f32.mrf.mxu0  ;;  %v1337_v18 = vpop.f32.mrf.mxu1 }
 0x1e3   :  { %2637 = vtanh.f32 %v1143_v15  ;;  %v1145_v19 = vadd.f32 %v1144_v17, %v3233_v2  ;;  %v1338_v20 = vadd.f32 %v1337_v18, %v3235_v4 }
 0x1e4   :  { %2639 = vtanh.f32 %v1336_v16  ;;  %v1148_v21 = vpop.f32.mrf.mxu0  ;;  %v1341_v22 = vpop.f32.mrf.mxu1 }
 0x1e5   :  { %2641 = vtanh.f32 %v1145_v19  ;;  %v1149_v23 = vadd.f32 %v1148_v21, %v3229_v63  ;;  %v1342_v24 = vadd.f32 %v1341_v22, %v3231_v1 }
 0x1e6   :  { %2643 = vtanh.f32 %v1338_v20  ;;  %v1150_v25 = vpop.f32.mrf.mxu0  ;;  %v1343_v26 = vpop.f32.mrf.mxu1 }
 0x1e7   :  { %2645 = vtanh.f32 %v1149_v23  ;;  %v1151_v27 = vadd.f32 %v1150_v25, %v3233_v2  ;;  %v1344_v28 = vadd.f32 %v1343_v26, %v3235_v4 }
 0x1e8   :  { %2647 = vtanh.f32 %v1342_v24  ;;  %v1152_v29 = vpop.f32.mrf.mxu0  ;;  %v1345_v30 = vpop.f32.mrf.mxu1 }
 0x1e9   :  { %2649 = vtanh.f32 %v1151_v27  ;;  %v1153_v31 = vadd.f32 %v1152_v29, %v3229_v63  ;;  %v1346_v32 = vadd.f32 %v1345_v30, %v3231_v1 }
 0x1ea   :  { %2651 = vtanh.f32 %v1344_v28  ;;  %v1154_v33 = vpop.f32.mrf.mxu0  ;;  %v1347_v34 = vpop.f32.mrf.mxu1 }
 0x1eb   :  { %2653 = vtanh.f32 %v1153_v31  ;;  %v1155_v35 = vadd.f32 %v1154_v33, %v3233_v2  ;;  %v1348_v36 = vadd.f32 %v1347_v34, %v3235_v4 }
 0x1ec   :  { %v2630_v37 = vpop.eup %2629  ;;  %2655 = vtanh.f32 %v1346_v32  ;;  %v1158_v38 = vpop.f32.mrf.mxu0 }
 0x1ed   :  { %v1351_v39 = vpop.f32.mrf.mxu1  ;;  %v2632_v40 = vpop.eup %2631  ;;  %2657 = vtanh.f32 %v1155_v35  ;;  %v1159_v41 = vadd.f32 %v1158_v38, %v3229_v63 }
 0x1ee   :  { %v1352_v42 = vadd.f32 %v1351_v39, %v3231_v1  ;;  %v2634_v43 = vpop.eup %2633  ;;  %2659 = vtanh.f32 %v1348_v36  ;;  %v1160_v44 = vpop.f32.mrf.mxu0 }
 0x1ef   :  { %v1353_v45 = vpop.f32.mrf.mxu1  ;;  %v2636_v46 = vpop.eup %2635  ;;  %v2250_v47 = vpack.c.bf16 %v2634_v43, %v2630_v37  ;;  %2661 = vtanh.f32 %v1159_v41  ;;  %v1161_v48 = vadd.f32 %v1160_v44, %v3233_v2 }
 0x1f0   :  { %v1354_v49 = vadd.f32 %v1353_v45, %v3235_v4  ;;  %v2638_v50 = vpop.eup %2637  ;;  %v2251_v51 = vpack.c.bf16 %v2636_v46, %v2632_v40  ;;  %2663 = vtanh.f32 %v1352_v42  ;;  %v1162_v52 = vpop.f32.mrf.mxu0 }
 0x1f1   :  { %v1355_v53 = vpop.f32.mrf.mxu1  ;;  %v2640_v54 = vpop.eup %2639  ;;  %2035 = vst [vmem:[#allocation8] sm:$0xff] %v2250_v47  ;;  %2665 = vtanh.f32 %v1161_v48  ;;  %v1163_v55 = vadd.f32 %v1162_v52, %v3229_v63 }
 0x1f2   :  { %v1356_v56 = vadd.f32 %v1355_v53, %v3231_v1  ;;  %v2642_v57 = vpop.eup %2641  ;;  %2036 = vst [vmem:[#allocation8 + $0x8] sm:$0xff] %v2251_v51  ;;  %2667 = vtanh.f32 %v1354_v49  ;;  %v1164_v3 = vpop.f32.mrf.mxu0 }
 0x1f3   :  { %v1357_v58 = vpop.f32.mrf.mxu1  ;;  %v2644_v59 = vpop.eup %2643  ;;  %v2252_v60 = vpack.c.bf16 %v2642_v57, %v2638_v50  ;;  %2669 = vtanh.f32 %v1163_v55  ;;  %v1165_v0 = vadd.f32 %v1164_v3, %v3233_v2 }
 0x1f4   :  { %v1358_v61 = vadd.f32 %v1357_v58, %v3235_v4  ;;  %v2646_v62 = vpop.eup %2645  ;;  %v2253_v5 = vpack.c.bf16 %v2644_v59, %v2640_v54  ;;  %2671 = vtanh.f32 %v1356_v56  ;;  %v1168_v6 = vpop.f32.mrf.mxu0 }
 0x1f5   :  { %v1361_v7 = vpop.f32.mrf.mxu1  ;;  %v2648_v8 = vpop.eup %2647  ;;  %2037 = vst [vmem:[#allocation8 + $0x10] sm:$0xff] %v2252_v60  ;;  %2673 = vtanh.f32 %v1165_v0  ;;  %v1169_v9 = vadd.f32 %v1168_v6, %v3229_v63 }
 0x1f6   :  { %v1362_v10 = vadd.f32 %v1361_v7, %v3231_v1  ;;  %v2650_v11 = vpop.eup %2649  ;;  %2038 = vst [vmem:[#allocation8 + $0x18] sm:$0xff] %v2253_v5  ;;  %2675 = vtanh.f32 %v1358_v61  ;;  %v1170_v12 = vpop.f32.mrf.mxu0 }
 0x1f7   :  { %v1363_v13 = vpop.f32.mrf.mxu1  ;;  %v2652_v14 = vpop.eup %2651  ;;  %v2254_v15 = vpack.c.bf16 %v2650_v11, %v2646_v62  ;;  %2677 = vtanh.f32 %v1169_v9  ;;  %v1171_v16 = vadd.f32 %v1170_v12, %v3233_v2 }
 0x1f8   :  { %v1364_v17 = vadd.f32 %v1363_v13, %v3235_v4  ;;  %v2654_v18 = vpop.eup %2653  ;;  %v2255_v19 = vpack.c.bf16 %v2652_v14, %v2648_v8  ;;  %2679 = vtanh.f32 %v1362_v10  ;;  %v1172_v20 = vpop.f32.mrf.mxu0 }
 0x1f9   :  { %v1365_v21 = vpop.f32.mrf.mxu1  ;;  %v2656_v22 = vpop.eup %2655  ;;  %2039 = vst [vmem:[#allocation8 + $0x20] sm:$0xff] %v2254_v15  ;;  %2681 = vtanh.f32 %v1171_v16  ;;  %v1173_v23 = vadd.f32 %v1172_v20, %v3229_v63 }
 0x1fa   :  { %v1366_v24 = vadd.f32 %v1365_v21, %v3231_v1  ;;  %v2658_v25 = vpop.eup %2657  ;;  %2040 = vst [vmem:[#allocation8 + $0x28] sm:$0xff] %v2255_v19  ;;  %2683 = vtanh.f32 %v1364_v17  ;;  %v1174_v26 = vpop.f32.mrf.mxu0 }
 0x1fb   :  { %v1367_v27 = vpop.f32.mrf.mxu1  ;;  %v2660_v28 = vpop.eup %2659  ;;  %v2256_v29 = vpack.c.bf16 %v2658_v25, %v2654_v18  ;;  %2685 = vtanh.f32 %v1173_v23  ;;  %v1175_v30 = vadd.f32 %v1174_v26, %v3233_v2 }
 0x1fc   :  { %v1368_v31 = vadd.f32 %v1367_v27, %v3235_v4  ;;  %v2662_v32 = vpop.eup %2661  ;;  %v2257_v33 = vpack.c.bf16 %v2660_v28, %v2656_v22  ;;  %2687 = vtanh.f32 %v1366_v24  ;;  %v1178_v34 = vpop.f32.mrf.mxu0 }
 0x1fd   :  { %v1371_v35 = vpop.f32.mrf.mxu1  ;;  %v2664_v36 = vpop.eup %2663  ;;  %2041 = vst [vmem:[#allocation8 + $0x30] sm:$0xff] %v2256_v29  ;;  %2689 = vtanh.f32 %v1175_v30  ;;  %v1179_v37 = vadd.f32 %v1178_v34, %v3229_v63 }
 0x1fe   :  { %v1372_v38 = vadd.f32 %v1371_v35, %v3231_v1  ;;  %v2666_v39 = vpop.eup %2665  ;;  %2042 = vst [vmem:[#allocation8 + $0x38] sm:$0xff] %v2257_v33  ;;  %2691 = vtanh.f32 %v1368_v31  ;;  %v1180_v40 = vpop.f32.mrf.mxu0 }
 0x1ff   :  { %v1373_v41 = vpop.f32.mrf.mxu1  ;;  %v2668_v42 = vpop.eup %2667  ;;  %v2258_v43 = vpack.c.bf16 %v2666_v39, %v2662_v32  ;;  %2693 = vtanh.f32 %v1179_v37  ;;  %v1181_v44 = vadd.f32 %v1180_v40, %v3233_v2 }
 0x200   :  { %v1374_v45 = vadd.f32 %v1373_v41, %v3235_v4  ;;  %v2670_v46 = vpop.eup %2669  ;;  %v2259_v47 = vpack.c.bf16 %v2668_v42, %v2664_v36  ;;  %2695 = vtanh.f32 %v1372_v38  ;;  %v1182_v48 = vpop.f32.mrf.mxu0 }
 0x201   :  { %v1375_v49 = vpop.f32.mrf.mxu1  ;;  %v2672_v50 = vpop.eup %2671  ;;  %2043 = vst [vmem:[#allocation8 + $0x40] sm:$0xff] %v2258_v43  ;;  %2697 = vtanh.f32 %v1181_v44  ;;  %v1183_v51 = vadd.f32 %v1182_v48, %v3229_v63 }
 0x202   :  { %v1376_v52 = vadd.f32 %v1375_v49, %v3231_v1  ;;  %v2674_v53 = vpop.eup %2673  ;;  %2044 = vst [vmem:[#allocation8 + $0x48] sm:$0xff] %v2259_v47  ;;  %2699 = vtanh.f32 %v1374_v45  ;;  %v1184_v54 = vpop.f32.mrf.mxu0 }
 0x203   :  { %v1377_v55 = vpop.f32.mrf.mxu1  ;;  %v2676_v56 = vpop.eup %2675  ;;  %v2260_v57 = vpack.c.bf16 %v2674_v53, %v2670_v46  ;;  %2701 = vtanh.f32 %v1183_v51  ;;  %v1185_v3 = vadd.f32 %v1184_v54, %v3233_v2 }
 0x204   :  { %v1378_v58 = vadd.f32 %v1377_v55, %v3235_v4  ;;  %v2678_v59 = vpop.eup %2677  ;;  %v2261_v60 = vpack.c.bf16 %v2676_v56, %v2672_v50  ;;  %2703 = vtanh.f32 %v1376_v52  ;;  %v1188_v0 = vpop.f32.mrf.mxu0 }
 0x205   :  { %v1381_v61 = vpop.f32.mrf.mxu1  ;;  %v2680_v62 = vpop.eup %2679  ;;  %2045 = vst [vmem:[#allocation8 + $0x50] sm:$0xff] %v2260_v57  ;;  %2705 = vtanh.f32 %v1185_v3  ;;  %v1189_v5 = vadd.f32 %v1188_v0, %v3229_v63 }
 0x206   :  { %v1382_v6 = vadd.f32 %v1381_v61, %v3231_v1  ;;  %v2682_v7 = vpop.eup %2681  ;;  %2046 = vst [vmem:[#allocation8 + $0x58] sm:$0xff] %v2261_v60  ;;  %2707 = vtanh.f32 %v1378_v58  ;;  %v1190_v8 = vpop.f32.mrf.mxu0 }
 0x207   :  { %v1383_v9 = vpop.f32.mrf.mxu1  ;;  %v2684_v10 = vpop.eup %2683  ;;  %v2262_v11 = vpack.c.bf16 %v2682_v7, %v2678_v59  ;;  %2709 = vtanh.f32 %v1189_v5  ;;  %v1191_v12 = vadd.f32 %v1190_v8, %v3233_v2 }
 0x208   :  { %v1384_v13 = vadd.f32 %v1383_v9, %v3235_v4  ;;  %v2686_v14 = vpop.eup %2685  ;;  %v2263_v15 = vpack.c.bf16 %v2684_v10, %v2680_v62  ;;  %2711 = vtanh.f32 %v1382_v6  ;;  %v1192_v16 = vpop.f32.mrf.mxu0 }
 0x209   :  { %v1385_v17 = vpop.f32.mrf.mxu1  ;;  %v2688_v18 = vpop.eup %2687  ;;  %2047 = vst [vmem:[#allocation8 + $0x60] sm:$0xff] %v2262_v11  ;;  %2713 = vtanh.f32 %v1191_v12  ;;  %v1193_v19 = vadd.f32 %v1192_v16, %v3229_v63 }
 0x20a   :  { %v1386_v20 = vadd.f32 %v1385_v17, %v3231_v1  ;;  %v2690_v21 = vpop.eup %2689  ;;  %2048 = vst [vmem:[#allocation8 + $0x68] sm:$0xff] %v2263_v15  ;;  %2715 = vtanh.f32 %v1384_v13  ;;  %v1194_v22 = vpop.f32.mrf.mxu0 }
 0x20b   :  { %v1387_v23 = vpop.f32.mrf.mxu1  ;;  %v2692_v24 = vpop.eup %2691  ;;  %v2264_v25 = vpack.c.bf16 %v2690_v21, %v2686_v14  ;;  %2717 = vtanh.f32 %v1193_v19  ;;  %v1195_v26 = vadd.f32 %v1194_v22, %v3233_v2 }
 0x20c   :  { %v1388_v27 = vadd.f32 %v1387_v23, %v3235_v4  ;;  %v2694_v28 = vpop.eup %2693  ;;  %v2265_v29 = vpack.c.bf16 %v2692_v24, %v2688_v18  ;;  %2719 = vtanh.f32 %v1386_v20  ;;  %v1198_v30 = vpop.f32.mrf.mxu0 }
 0x20d   :  { %v1391_v31 = vpop.f32.mrf.mxu1  ;;  %v2696_v32 = vpop.eup %2695  ;;  %2049 = vst [vmem:[#allocation8 + $0x70] sm:$0xff] %v2264_v25  ;;  %2721 = vtanh.f32 %v1195_v26  ;;  %v1199_v33 = vadd.f32 %v1198_v30, %v3229_v63 }
 0x20e   :  { %v1392_v34 = vadd.f32 %v1391_v31, %v3231_v1  ;;  %v2698_v35 = vpop.eup %2697  ;;  %2050 = vst [vmem:[#allocation8 + $0x78] sm:$0xff] %v2265_v29  ;;  %2723 = vtanh.f32 %v1388_v27  ;;  %v1200_v36 = vpop.f32.mrf.mxu0 }
 0x20f   :  { %v1393_v37 = vpop.f32.mrf.mxu1  ;;  %v2700_v38 = vpop.eup %2699  ;;  %v2266_v39 = vpack.c.bf16 %v2698_v35, %v2694_v28  ;;  %2725 = vtanh.f32 %v1199_v33  ;;  %v1201_v40 = vadd.f32 %v1200_v36, %v3233_v2 }
 0x210   :  { %v1394_v41 = vadd.f32 %v1393_v37, %v3235_v4  ;;  %v2702_v42 = vpop.eup %2701  ;;  %v2267_v43 = vpack.c.bf16 %v2700_v38, %v2696_v32  ;;  %2727 = vtanh.f32 %v1392_v34  ;;  %v1202_v44 = vpop.f32.mrf.mxu0 }
 0x211   :  { %v1395_v45 = vpop.f32.mrf.mxu1  ;;  %v2704_v46 = vpop.eup %2703  ;;  %2051 = vst [vmem:[#allocation8 + $0x80] sm:$0xff] %v2266_v39  ;;  %2729 = vtanh.f32 %v1201_v40  ;;  %v1203_v47 = vadd.f32 %v1202_v44, %v3229_v63 }
 0x212   :  { %v1396_v48 = vadd.f32 %v1395_v45, %v3231_v1  ;;  %v2706_v49 = vpop.eup %2705  ;;  %2052 = vst [vmem:[#allocation8 + $0x88] sm:$0xff] %v2267_v43  ;;  %2731 = vtanh.f32 %v1394_v41  ;;  %v1204_v50 = vpop.f32.mrf.mxu0 }
 0x213   :  { %v1397_v51 = vpop.f32.mrf.mxu1  ;;  %v2708_v52 = vpop.eup %2707  ;;  %v2268_v53 = vpack.c.bf16 %v2706_v49, %v2702_v42  ;;  %2733 = vtanh.f32 %v1203_v47  ;;  %v1205_v54 = vadd.f32 %v1204_v50, %v3233_v2 }
 0x214   :  { %v1398_v55 = vadd.f32 %v1397_v51, %v3235_v4  ;;  %v2710_v56 = vpop.eup %2709  ;;  %v2269_v57 = vpack.c.bf16 %v2708_v52, %v2704_v46  ;;  %2735 = vtanh.f32 %v1396_v48  ;;  %v1208_v3 = vpop.f32.mrf.mxu0 }
 0x215   :  { %v1401_v58 = vpop.f32.mrf.mxu1  ;;  %v2712_v59 = vpop.eup %2711  ;;  %2053 = vst [vmem:[#allocation8 + $0x90] sm:$0xff] %v2268_v53  ;;  %2737 = vtanh.f32 %v1205_v54  ;;  %v1209_v60 = vadd.f32 %v1208_v3, %v3229_v63 }
 0x216   :  { %v1402_v0 = vadd.f32 %v1401_v58, %v3231_v1  ;;  %v2714_v61 = vpop.eup %2713  ;;  %2054 = vst [vmem:[#allocation8 + $0x98] sm:$0xff] %v2269_v57  ;;  %2739 = vtanh.f32 %v1398_v55  ;;  %v1210_v62 = vpop.f32.mrf.mxu0 }
 0x217   :  { %v1403_v5 = vpop.f32.mrf.mxu1  ;;  %v2716_v6 = vpop.eup %2715  ;;  %v2270_v7 = vpack.c.bf16 %v2714_v61, %v2710_v56  ;;  %2741 = vtanh.f32 %v1209_v60  ;;  %v1211_v8 = vadd.f32 %v1210_v62, %v3233_v2 }
 0x218   :  { %v1404_v9 = vadd.f32 %v1403_v5, %v3235_v4  ;;  %v2718_v10 = vpop.eup %2717  ;;  %v2271_v11 = vpack.c.bf16 %v2716_v6, %v2712_v59  ;;  %2743 = vtanh.f32 %v1402_v0  ;;  %v1212_v12 = vpop.f32.mrf.mxu0 }
 0x219   :  { %v1405_v13 = vpop.f32.mrf.mxu1  ;;  %v2720_v14 = vpop.eup %2719  ;;  %2055 = vst [vmem:[#allocation8 + $0xa0] sm:$0xff] %v2270_v7  ;;  %2745 = vtanh.f32 %v1211_v8  ;;  %v1213_v15 = vadd.f32 %v1212_v12, %v3229_v63 }
 0x21a   :  { %v1406_v16 = vadd.f32 %v1405_v13, %v3231_v1  ;;  %v2722_v17 = vpop.eup %2721  ;;  %2056 = vst [vmem:[#allocation8 + $0xa8] sm:$0xff] %v2271_v11  ;;  %2747 = vtanh.f32 %v1404_v9  ;;  %v1214_v18 = vpop.f32.mrf.mxu0 }
 0x21b   :  { %v1407_v19 = vpop.f32.mrf.mxu1  ;;  %v2724_v20 = vpop.eup %2723  ;;  %v2272_v21 = vpack.c.bf16 %v2722_v17, %v2718_v10  ;;  %2749 = vtanh.f32 %v1213_v15  ;;  %v1215_v22 = vadd.f32 %v1214_v18, %v3233_v2 }
 0x21c   :  { %v1408_v23 = vadd.f32 %v1407_v19, %v3235_v4  ;;  %v2726_v24 = vpop.eup %2725  ;;  %v2273_v25 = vpack.c.bf16 %v2724_v20, %v2720_v14  ;;  %2751 = vtanh.f32 %v1406_v16  ;;  %v1218_v26 = vpop.f32.mrf.mxu0 }
 0x21d   :  { %v1411_v27 = vpop.f32.mrf.mxu1  ;;  %v2728_v28 = vpop.eup %2727  ;;  %2057 = vst [vmem:[#allocation8 + $0xb0] sm:$0xff] %v2272_v21  ;;  %2753 = vtanh.f32 %v1215_v22  ;;  %v1219_v29 = vadd.f32 %v1218_v26, %v3229_v63 }
 0x21e   :  { %v1412_v30 = vadd.f32 %v1411_v27, %v3231_v1  ;;  %v2730_v31 = vpop.eup %2729  ;;  %2058 = vst [vmem:[#allocation8 + $0xb8] sm:$0xff] %v2273_v25  ;;  %2755 = vtanh.f32 %v1408_v23  ;;  %v1220_v32 = vpop.f32.mrf.mxu0 }
 0x21f   :  { %v1413_v33 = vpop.f32.mrf.mxu1  ;;  %v2732_v34 = vpop.eup %2731  ;;  %v2274_v35 = vpack.c.bf16 %v2730_v31, %v2726_v24  ;;  %2757 = vtanh.f32 %v1219_v29  ;;  %v1221_v36 = vadd.f32 %v1220_v32, %v3233_v2 }
 0x220   :  { %v1414_v37 = vadd.f32 %v1413_v33, %v3235_v4  ;;  %v2734_v38 = vpop.eup %2733  ;;  %v2275_v39 = vpack.c.bf16 %v2732_v34, %v2728_v28  ;;  %2759 = vtanh.f32 %v1412_v30  ;;  %v1222_v40 = vpop.f32.mrf.mxu0 }
 0x221   :  { %v1415_v41 = vpop.f32.mrf.mxu1  ;;  %v2736_v42 = vpop.eup %2735  ;;  %2059 = vst [vmem:[#allocation8 + $0xc0] sm:$0xff] %v2274_v35  ;;  %2761 = vtanh.f32 %v1221_v36  ;;  %v1223_v43 = vadd.f32 %v1222_v40, %v3229_v63 }
 0x222   :  { %v1416_v44 = vadd.f32 %v1415_v41, %v3231_v1  ;;  %v2738_v45 = vpop.eup %2737  ;;  %2060 = vst [vmem:[#allocation8 + $0xc8] sm:$0xff] %v2275_v39  ;;  %2763 = vtanh.f32 %v1414_v37  ;;  %v1224_v46 = vpop.f32.mrf.mxu0 }
 0x223   :  { %v1417_v47 = vpop.f32.mrf.mxu1  ;;  %v2740_v48 = vpop.eup %2739  ;;  %v2276_v49 = vpack.c.bf16 %v2738_v45, %v2734_v38  ;;  %2765 = vtanh.f32 %v1223_v43  ;;  %v1225_v50 = vadd.f32 %v1224_v46, %v3233_v2 }
 0x224   :  { %v1418_v51 = vadd.f32 %v1417_v47, %v3235_v4  ;;  %v2742_v52 = vpop.eup %2741  ;;  %v2277_v53 = vpack.c.bf16 %v2740_v48, %v2736_v42  ;;  %2767 = vtanh.f32 %v1416_v44  ;;  %v1228_v54 = vpop.f32.mrf.mxu0 }
 0x225   :  { %v1421_v55 = vpop.f32.mrf.mxu1  ;;  %v2744_v56 = vpop.eup %2743  ;;  %2061 = vst [vmem:[#allocation8 + $0xd0] sm:$0xff] %v2276_v49  ;;  %2769 = vtanh.f32 %v1225_v50  ;;  %v1229_v57 = vadd.f32 %v1228_v54, %v3229_v63 }
 0x226   :  { %v1422_v3 = vadd.f32 %v1421_v55, %v3231_v1  ;;  %v2746_v58 = vpop.eup %2745  ;;  %2062 = vst [vmem:[#allocation8 + $0xd8] sm:$0xff] %v2277_v53  ;;  %2771 = vtanh.f32 %v1418_v51  ;;  %v1230_v59 = vpop.f32.mrf.mxu0 }
 0x227   :  { %v1423_v60 = vpop.f32.mrf.mxu1  ;;  %v2748_v0 = vpop.eup %2747  ;;  %v2278_v61 = vpack.c.bf16 %v2746_v58, %v2742_v52  ;;  %2773 = vtanh.f32 %v1229_v57  ;;  %v1231_v62 = vadd.f32 %v1230_v59, %v3233_v2 }
 0x228   :  { %v1424_v5 = vadd.f32 %v1423_v60, %v3235_v4  ;;  %v2750_v6 = vpop.eup %2749  ;;  %v2279_v7 = vpack.c.bf16 %v2748_v0, %v2744_v56  ;;  %2775 = vtanh.f32 %v1422_v3  ;;  %v1232_v8 = vpop.f32.mrf.mxu0 }
 0x229   :  { %v1425_v9 = vpop.f32.mrf.mxu1  ;;  %v2752_v10 = vpop.eup %2751  ;;  %2063 = vst [vmem:[#allocation8 + $0xe0] sm:$0xff] %v2278_v61  ;;  %2777 = vtanh.f32 %v1231_v62  ;;  %v1233_v11 = vadd.f32 %v1232_v8, %v3229_v63 }
 0x22a   :  { %v1426_v12 = vadd.f32 %v1425_v9, %v3231_v1  ;;  %v2754_v13 = vpop.eup %2753  ;;  %2064 = vst [vmem:[#allocation8 + $0xe8] sm:$0xff] %v2279_v7  ;;  %2779 = vtanh.f32 %v1424_v5  ;;  %v1234_v14 = vpop.f32.mrf.mxu0 }
 0x22b   :  { %v1427_v15 = vpop.f32.mrf.mxu1  ;;  %v2756_v16 = vpop.eup %2755  ;;  %v2280_v17 = vpack.c.bf16 %v2754_v13, %v2750_v6  ;;  %2781 = vtanh.f32 %v1233_v11  ;;  %v1235_v18 = vadd.f32 %v1234_v14, %v3233_v2 }
 0x22c   :  { %v1428_v19 = vadd.f32 %v1427_v15, %v3235_v4  ;;  %v2758_v20 = vpop.eup %2757  ;;  %v2281_v21 = vpack.c.bf16 %v2756_v16, %v2752_v10  ;;  %2783 = vtanh.f32 %v1426_v12  ;;  %v1238_v22 = vpop.f32.mrf.mxu0 }
 0x22d   :  { %v1431_v23 = vpop.f32.mrf.mxu1  ;;  %v2760_v24 = vpop.eup %2759  ;;  %2065 = vst [vmem:[#allocation8 + $0xf0] sm:$0xff] %v2280_v17  ;;  %2785 = vtanh.f32 %v1235_v18  ;;  %v1239_v25 = vadd.f32 %v1238_v22, %v3229_v63 }
 0x22e   :  { %v1432_v26 = vadd.f32 %v1431_v23, %v3231_v1  ;;  %v2762_v27 = vpop.eup %2761  ;;  %2066 = vst [vmem:[#allocation8 + $0xf8] sm:$0xff] %v2281_v21  ;;  %2787 = vtanh.f32 %v1428_v19  ;;  %v1240_v28 = vpop.f32.mrf.mxu0 }
 0x22f   :  { %v1433_v29 = vpop.f32.mrf.mxu1  ;;  %v2764_v30 = vpop.eup %2763  ;;  %v2282_v31 = vpack.c.bf16 %v2762_v27, %v2758_v20  ;;  %2789 = vtanh.f32 %v1239_v25  ;;  %v1241_v32 = vadd.f32 %v1240_v28, %v3233_v2 }
 0x230   :  { %v1434_v33 = vadd.f32 %v1433_v29, %v3235_v4  ;;  %v2766_v34 = vpop.eup %2765  ;;  %v2283_v35 = vpack.c.bf16 %v2764_v30, %v2760_v24  ;;  %2791 = vtanh.f32 %v1432_v26  ;;  %v1242_v36 = vpop.f32.mrf.mxu0 }
 0x231   :  { %v1435_v37 = vpop.f32.mrf.mxu1  ;;  %v2768_v38 = vpop.eup %2767  ;;  %2067 = vst [vmem:[#allocation8 + $0x100] sm:$0xff] %v2282_v31  ;;  %2793 = vtanh.f32 %v1241_v32  ;;  %v1243_v39 = vadd.f32 %v1242_v36, %v3229_v63 }
 0x232   :  { %v1436_v40 = vadd.f32 %v1435_v37, %v3231_v1  ;;  %v2770_v41 = vpop.eup %2769  ;;  %2068 = vst [vmem:[#allocation8 + $0x108] sm:$0xff] %v2283_v35  ;;  %2795 = vtanh.f32 %v1434_v33  ;;  %v1244_v42 = vpop.f32.mrf.mxu0 }
 0x233   :  { %v1437_v43 = vpop.f32.mrf.mxu1  ;;  %v2772_v44 = vpop.eup %2771  ;;  %v2284_v45 = vpack.c.bf16 %v2770_v41, %v2766_v34  ;;  %2797 = vtanh.f32 %v1243_v39  ;;  %v1245_v46 = vadd.f32 %v1244_v42, %v3233_v2 }
 0x234   :  { %v1438_v47 = vadd.f32 %v1437_v43, %v3235_v4  ;;  %v2774_v48 = vpop.eup %2773  ;;  %v2285_v49 = vpack.c.bf16 %v2772_v44, %v2768_v38  ;;  %2799 = vtanh.f32 %v1436_v40  ;;  %v1248_v50 = vpop.f32.mrf.mxu0 }
 0x235   :  { %v1441_v51 = vpop.f32.mrf.mxu1  ;;  %v2776_v52 = vpop.eup %2775  ;;  %2069 = vst [vmem:[#allocation8 + $0x110] sm:$0xff] %v2284_v45  ;;  %2801 = vtanh.f32 %v1245_v46  ;;  %v1249_v53 = vadd.f32 %v1248_v50, %v3229_v63 }
 0x236   :  { %v1442_v54 = vadd.f32 %v1441_v51, %v3231_v1  ;;  %v2778_v55 = vpop.eup %2777  ;;  %2070 = vst [vmem:[#allocation8 + $0x118] sm:$0xff] %v2285_v49  ;;  %2803 = vtanh.f32 %v1438_v47  ;;  %v1250_v56 = vpop.f32.mrf.mxu0 }
 0x237   :  { %v1443_v57 = vpop.f32.mrf.mxu1  ;;  %v2780_v3 = vpop.eup %2779  ;;  %v2286_v58 = vpack.c.bf16 %v2778_v55, %v2774_v48  ;;  %2805 = vtanh.f32 %v1249_v53  ;;  %v1251_v59 = vadd.f32 %v1250_v56, %v3233_v2 }
 0x238   :  { %v1444_v60 = vadd.f32 %v1443_v57, %v3235_v4  ;;  %v2782_v0 = vpop.eup %2781  ;;  %v2287_v61 = vpack.c.bf16 %v2780_v3, %v2776_v52  ;;  %2807 = vtanh.f32 %v1442_v54  ;;  %v1252_v62 = vpop.f32.mrf.mxu0 }
 0x239   :  { %v1445_v5 = vpop.f32.mrf.mxu1  ;;  %v2784_v6 = vpop.eup %2783  ;;  %2071 = vst [vmem:[#allocation8 + $0x120] sm:$0xff] %v2286_v58  ;;  %2809 = vtanh.f32 %v1251_v59  ;;  %v1253_v7 = vadd.f32 %v1252_v62, %v3229_v63 }
 0x23a   :  { %v1446_v8 = vadd.f32 %v1445_v5, %v3231_v1  ;;  %v2786_v9 = vpop.eup %2785  ;;  %2072 = vst [vmem:[#allocation8 + $0x128] sm:$0xff] %v2287_v61  ;;  %2811 = vtanh.f32 %v1444_v60  ;;  %v1254_v10 = vpop.f32.mrf.mxu0 }
 0x23b   :  { %v1447_v11 = vpop.f32.mrf.mxu1  ;;  %v2788_v12 = vpop.eup %2787  ;;  %v2288_v13 = vpack.c.bf16 %v2786_v9, %v2782_v0  ;;  %2813 = vtanh.f32 %v1253_v7  ;;  %v1255_v14 = vadd.f32 %v1254_v10, %v3233_v2 }
 0x23c   :  { %v1448_v15 = vadd.f32 %v1447_v11, %v3235_v4  ;;  %v2790_v16 = vpop.eup %2789  ;;  %v2289_v17 = vpack.c.bf16 %v2788_v12, %v2784_v6  ;;  %2815 = vtanh.f32 %v1446_v8  ;;  %v1258_v18 = vpop.f32.mrf.mxu0 }
 0x23d   :  { %v1451_v19 = vpop.f32.mrf.mxu1  ;;  %v2792_v20 = vpop.eup %2791  ;;  %2073 = vst [vmem:[#allocation8 + $0x130] sm:$0xff] %v2288_v13  ;;  %2817 = vtanh.f32 %v1255_v14  ;;  %v1259_v21 = vadd.f32 %v1258_v18, %v3229_v63 }
 0x23e   :  { %v1452_v22 = vadd.f32 %v1451_v19, %v3231_v1  ;;  %v2794_v23 = vpop.eup %2793  ;;  %2074 = vst [vmem:[#allocation8 + $0x138] sm:$0xff] %v2289_v17  ;;  %2819 = vtanh.f32 %v1448_v15  ;;  %v1260_v24 = vpop.f32.mrf.mxu0 }
 0x23f   :  { %v1453_v25 = vpop.f32.mrf.mxu1  ;;  %v2796_v26 = vpop.eup %2795  ;;  %v2290_v27 = vpack.c.bf16 %v2794_v23, %v2790_v16  ;;  %2821 = vtanh.f32 %v1259_v21  ;;  %v1261_v28 = vadd.f32 %v1260_v24, %v3233_v2 }
 0x240   :  { %v1454_v29 = vadd.f32 %v1453_v25, %v3235_v4  ;;  %v2798_v30 = vpop.eup %2797  ;;  %v2291_v31 = vpack.c.bf16 %v2796_v26, %v2792_v20  ;;  %2823 = vtanh.f32 %v1452_v22  ;;  %v1262_v32 = vpop.f32.mrf.mxu0 }
 0x241   :  { %v1455_v33 = vpop.f32.mrf.mxu1  ;;  %v2800_v34 = vpop.eup %2799  ;;  %2075 = vst [vmem:[#allocation8 + $0x140] sm:$0xff] %v2290_v27  ;;  %2825 = vtanh.f32 %v1261_v28  ;;  %v1263_v35 = vadd.f32 %v1262_v32, %v3229_v63 }
 0x242   :  { %v1456_v36 = vadd.f32 %v1455_v33, %v3231_v1  ;;  %v2802_v37 = vpop.eup %2801  ;;  %2076 = vst [vmem:[#allocation8 + $0x148] sm:$0xff] %v2291_v31  ;;  %2827 = vtanh.f32 %v1454_v29  ;;  %v1264_v38 = vpop.f32.mrf.mxu0 }
 0x243   :  { %v1457_v39 = vpop.f32.mrf.mxu1  ;;  %v2804_v40 = vpop.eup %2803  ;;  %v2292_v41 = vpack.c.bf16 %v2802_v37, %v2798_v30  ;;  %2829 = vtanh.f32 %v1263_v35  ;;  %v1265_v42 = vadd.f32 %v1264_v38, %v3233_v2 }
 0x244   :  { %v1458_v43 = vadd.f32 %v1457_v39, %v3235_v4  ;;  %v2806_v44 = vpop.eup %2805  ;;  %v2293_v45 = vpack.c.bf16 %v2804_v40, %v2800_v34  ;;  %2831 = vtanh.f32 %v1456_v36  ;;  %v1268_v46 = vpop.f32.mrf.mxu0 }
 0x245   :  { %v1461_v47 = vpop.f32.mrf.mxu1  ;;  %v2808_v48 = vpop.eup %2807  ;;  %2077 = vst [vmem:[#allocation8 + $0x150] sm:$0xff] %v2292_v41  ;;  %2833 = vtanh.f32 %v1265_v42  ;;  %v1269_v49 = vadd.f32 %v1268_v46, %v3229_v63 }
 0x246   :  { %v1462_v50 = vadd.f32 %v1461_v47, %v3231_v1  ;;  %v2810_v51 = vpop.eup %2809  ;;  %2078 = vst [vmem:[#allocation8 + $0x158] sm:$0xff] %v2293_v45  ;;  %2835 = vtanh.f32 %v1458_v43  ;;  %v1270_v52 = vpop.f32.mrf.mxu0 }
 0x247   :  { %v1463_v53 = vpop.f32.mrf.mxu1  ;;  %v2812_v54 = vpop.eup %2811  ;;  %v2294_v55 = vpack.c.bf16 %v2810_v51, %v2806_v44  ;;  %2837 = vtanh.f32 %v1269_v49  ;;  %v1271_v56 = vadd.f32 %v1270_v52, %v3233_v2 }
 0x248   :  { %v1464_v57 = vadd.f32 %v1463_v53, %v3235_v4  ;;  %v2814_v3 = vpop.eup %2813  ;;  %v2295_v58 = vpack.c.bf16 %v2812_v54, %v2808_v48  ;;  %2839 = vtanh.f32 %v1462_v50  ;;  %v1272_v59 = vpop.f32.mrf.mxu0 }
 0x249   :  { %v1465_v60 = vpop.f32.mrf.mxu1  ;;  %v2816_v0 = vpop.eup %2815  ;;  %2079 = vst [vmem:[#allocation8 + $0x160] sm:$0xff] %v2294_v55  ;;  %2841 = vtanh.f32 %v1271_v56  ;;  %v1273_v61 = vadd.f32 %v1272_v59, %v3229_v63 }
 0x24a   :  { %v1466_v62 = vadd.f32 %v1465_v60, %v3231_v1  ;;  %v2818_v5 = vpop.eup %2817  ;;  %2080 = vst [vmem:[#allocation8 + $0x168] sm:$0xff] %v2295_v58  ;;  %2843 = vtanh.f32 %v1464_v57  ;;  %v1274_v6 = vpop.f32.mrf.mxu0 }
 0x24b   :  { %v1467_v7 = vpop.f32.mrf.mxu1  ;;  %v2820_v8 = vpop.eup %2819  ;;  %v2296_v9 = vpack.c.bf16 %v2818_v5, %v2814_v3  ;;  %2845 = vtanh.f32 %v1273_v61  ;;  %v1275_v10 = vadd.f32 %v1274_v6, %v3233_v2 }
 0x24c   :  { %v1468_v11 = vadd.f32 %v1467_v7, %v3235_v4  ;;  %v2822_v12 = vpop.eup %2821  ;;  %v2297_v13 = vpack.c.bf16 %v2820_v8, %v2816_v0  ;;  %2847 = vtanh.f32 %v1466_v62  ;;  %v1278_v14 = vpop.f32.mrf.mxu0 }
 0x24d   :  { %v1471_v15 = vpop.f32.mrf.mxu1  ;;  %v2824_v16 = vpop.eup %2823  ;;  %2081 = vst [vmem:[#allocation8 + $0x170] sm:$0xff] %v2296_v9  ;;  %2849 = vtanh.f32 %v1275_v10  ;;  %v1279_v17 = vadd.f32 %v1278_v14, %v3229_v63 }
 0x24e   :  { %v1472_v18 = vadd.f32 %v1471_v15, %v3231_v1  ;;  %v2826_v19 = vpop.eup %2825  ;;  %2082 = vst [vmem:[#allocation8 + $0x178] sm:$0xff] %v2297_v13  ;;  %2851 = vtanh.f32 %v1468_v11  ;;  %v1280_v20 = vpop.f32.mrf.mxu0 }
 0x24f   :  { %v1473_v21 = vpop.f32.mrf.mxu1  ;;  %v2828_v22 = vpop.eup %2827  ;;  %v2298_v23 = vpack.c.bf16 %v2826_v19, %v2822_v12  ;;  %2853 = vtanh.f32 %v1279_v17  ;;  %v1281_v24 = vadd.f32 %v1280_v20, %v3233_v2 }
 0x250   :  { %v1474_v25 = vadd.f32 %v1473_v21, %v3235_v4  ;;  %v2830_v26 = vpop.eup %2829  ;;  %v2299_v27 = vpack.c.bf16 %v2828_v22, %v2824_v16  ;;  %2855 = vtanh.f32 %v1472_v18  ;;  %v1282_v28 = vpop.f32.mrf.mxu0 }
 0x251   :  { %v1475_v29 = vpop.f32.mrf.mxu1  ;;  %v2832_v30 = vpop.eup %2831  ;;  %2083 = vst [vmem:[#allocation8 + $0x180] sm:$0xff] %v2298_v23  ;;  %2857 = vtanh.f32 %v1281_v24  ;;  %v1283_v31 = vadd.f32 %v1282_v28, %v3229_v63 }
 0x252   :  { %v1476_v32 = vadd.f32 %v1475_v29, %v3231_v1  ;;  %v2834_v33 = vpop.eup %2833  ;;  %2084 = vst [vmem:[#allocation8 + $0x188] sm:$0xff] %v2299_v27  ;;  %2859 = vtanh.f32 %v1474_v25  ;;  %v1284_v34 = vpop.f32.mrf.mxu0 }
 0x253   :  { %v1477_v35 = vpop.f32.mrf.mxu1  ;;  %v2836_v36 = vpop.eup %2835  ;;  %v2300_v37 = vpack.c.bf16 %v2834_v33, %v2830_v26  ;;  %2861 = vtanh.f32 %v1283_v31  ;;  %v1285_v38 = vadd.f32 %v1284_v34, %v3233_v2 }
 0x254   :  { %v1478_v39 = vadd.f32 %v1477_v35, %v3235_v4  ;;  %v2838_v40 = vpop.eup %2837  ;;  %v2301_v41 = vpack.c.bf16 %v2836_v36, %v2832_v30  ;;  %2863 = vtanh.f32 %v1476_v32  ;;  %v1288_v42 = vpop.f32.mrf.mxu0 }
 0x255   :  { %v1481_v43 = vpop.f32.mrf.mxu1  ;;  %v2840_v44 = vpop.eup %2839  ;;  %2085 = vst [vmem:[#allocation8 + $0x190] sm:$0xff] %v2300_v37  ;;  %2865 = vtanh.f32 %v1285_v38  ;;  %v1289_v45 = vadd.f32 %v1288_v42, %v3229_v63 }
 0x256   :  { %v1482_v46 = vadd.f32 %v1481_v43, %v3231_v1  ;;  %v2842_v47 = vpop.eup %2841  ;;  %2086 = vst [vmem:[#allocation8 + $0x198] sm:$0xff] %v2301_v41  ;;  %2867 = vtanh.f32 %v1478_v39  ;;  %v1290_v48 = vpop.f32.mrf.mxu0 }
 0x257   :  { %v1483_v49 = vpop.f32.mrf.mxu1  ;;  %v2844_v50 = vpop.eup %2843  ;;  %v2302_v51 = vpack.c.bf16 %v2842_v47, %v2838_v40  ;;  %2869 = vtanh.f32 %v1289_v45  ;;  %v1291_v52 = vadd.f32 %v1290_v48, %v3233_v2 }
 0x258   :  { %v1484_v53 = vadd.f32 %v1483_v49, %v3235_v4  ;;  %v2846_v54 = vpop.eup %2845  ;;  %v2303_v55 = vpack.c.bf16 %v2844_v50, %v2840_v44  ;;  %2871 = vtanh.f32 %v1482_v46  ;;  %v1292_v56 = vpop.f32.mrf.mxu0 }
 0x259   :  { %v1485_v57 = vpop.f32.mrf.mxu1  ;;  %v2848_v3 = vpop.eup %2847  ;;  %2087 = vst [vmem:[#allocation8 + $0x1a0] sm:$0xff] %v2302_v51  ;;  %2873 = vtanh.f32 %v1291_v52  ;;  %v1293_v58 = vadd.f32 %v1292_v56, %v3229_v63 }
 0x25a   :  { %v1486_v59 = vadd.f32 %v1485_v57, %v3231_v1  ;;  %v2850_v60 = vpop.eup %2849  ;;  %2088 = vst [vmem:[#allocation8 + $0x1a8] sm:$0xff] %v2303_v55  ;;  %2875 = vtanh.f32 %v1484_v53  ;;  %v1294_v0 = vpop.f32.mrf.mxu0 }
 0x25b   :  { %v1487_v61 = vpop.f32.mrf.mxu1  ;;  %v2852_v62 = vpop.eup %2851  ;;  %v2304_v5 = vpack.c.bf16 %v2850_v60, %v2846_v54  ;;  %2877 = vtanh.f32 %v1293_v58  ;;  %v1295_v6 = vadd.f32 %v1294_v0, %v3233_v2 }
 0x25c   :  { %v1488_v7 = vadd.f32 %v1487_v61, %v3235_v4  ;;  %v2854_v8 = vpop.eup %2853  ;;  %v2305_v9 = vpack.c.bf16 %v2852_v62, %v2848_v3  ;;  %2879 = vtanh.f32 %v1486_v59 }
 0x25d   :  { %v2856_v10 = vpop.eup %2855  ;;  %2089 = vst [vmem:[#allocation8 + $0x1b0] sm:$0xff] %v2304_v5  ;;  %2881 = vtanh.f32 %v1295_v6 }
 0x25e   :  { %v2858_v63 = vpop.eup %2857  ;;  %2090 = vst [vmem:[#allocation8 + $0x1b8] sm:$0xff] %v2305_v9  ;;  %2883 = vtanh.f32 %v1488_v7 }
 0x25f   :  { %v2860_v1 = vpop.eup %2859  ;;  %v2306_v11 = vpack.c.bf16 %v2858_v63, %v2854_v8 }
 0x260   :  { %v2862_v12 = vpop.eup %2861  ;;  %v2307_v13 = vpack.c.bf16 %v2860_v1, %v2856_v10 }
 0x261   :  { %v2864_v14 = vpop.eup %2863  ;;  %2091 = vst [vmem:[#allocation8 + $0x1c0] sm:$0xff] %v2306_v11 }
 0x262   :  { %v2866_v15 = vpop.eup %2865  ;;  %2092 = vst [vmem:[#allocation8 + $0x1c8] sm:$0xff] %v2307_v13 }
 0x263   :  { %v2868_v2 = vpop.eup %2867  ;;  %v2308_v16 = vpack.c.bf16 %v2866_v15, %v2862_v12 }
 0x264   :  { %v2870_v4 = vpop.eup %2869  ;;  %v2309_v17 = vpack.c.bf16 %v2868_v2, %v2864_v14 }
 0x265   :  { %v2872_v18 = vpop.eup %2871  ;;  %2093 = vst [vmem:[#allocation8 + $0x1d0] sm:$0xff] %v2308_v16 }
 0x266   :  { %v2874_v19 = vpop.eup %2873  ;;  %2094 = vst [vmem:[#allocation8 + $0x1d8] sm:$0xff] %v2309_v17 }
 0x267   :  { %v2876_v20 = vpop.eup %2875  ;;  %v2310_v21 = vpack.c.bf16 %v2874_v19, %v2870_v4 }
 0x268   :  { %v2878_v22 = vpop.eup %2877  ;;  %v2311_v23 = vpack.c.bf16 %v2876_v20, %v2872_v18 }
 0x269   :  { %v2880_v24 = vpop.eup %2879  ;;  %2095 = vst [vmem:[#allocation8 + $0x1e0] sm:$0xff] %v2310_v21 }
 0x26a   :  { %v2882_v25 = vpop.eup %2881  ;;  %2096 = vst [vmem:[#allocation8 + $0x1e8] sm:$0xff] %v2311_v23 }
 0x26b   :  { %v2884_v26 = vpop.eup %2883  ;;  %v2312_v27 = vpack.c.bf16 %v2882_v25, %v2878_v22 }
 0x26c   :  { %v2313_v28 = vpack.c.bf16 %v2884_v26, %v2880_v24 }
 0x26d   :  { %2097 = vst [vmem:[#allocation8 + $0x1f0] sm:$0xff] %v2312_v27 }
 0x26e   :  { %2098 = vst [vmem:[#allocation8 + $0x1f8] sm:$0xff] %v2313_v28 }
 0x26f   :  { %2956 = shalt.err (!%p2953_p5)
}
 0x270   :  { %2110 = dma.vmem_to_hbm [thread:$0]  %s2105_s6, 8192, %s3376_s5, [#allocation4], %s2978_s13, %s2978_s13, %s2979_s14  }
 0x271   :  { %2969 = dma.done.wait [#allocation4], 8192  }
 0x272   :  { %2970 = vsyncadd [#allocation4], 4294959104 }
 0x273   :  { %2118 = vsyncpa [#allocation3], 1 }
 0x274   :  { %2119 = vsyncpa [#allocation6], 1 }
 0x275   :  { %2120 = vsyncpa [#allocation4], 1 }

</bundles_post_ra>
